<compile_context>
chip_gen: v7x
topology: tpu7x:2x2x1
jax: 0.10.0
libtpu: 0.0.40
codegen_flags: <defaults>
</compile_context>

<pallas_src>
import math

import jax
import jax.numpy as jnp
from jax.experimental import pallas as pl
from jax.experimental.pallas import tpu as pltpu


# ----------------------------------------------------------------------------
# Pallas kernel: full forward pass of LSTMModel for one batch block.
# ----------------------------------------------------------------------------
def lstm_model_kernel(x_ref,             # (T*bb, IN) f32   time-major rows of this batch block
                      w1_ref, b1_ref,    # (IN, H), (1, H)                linear_1 (bf16 if IN>1)
                      wih0_ref,          # (H, 4H) bf16                   LSTM layer 0 input weights
                      whh0_ref,          # (H, 4H) bf16                   LSTM layer 0 recurrent weights
                      bias0_ref,         # (1, 4H) f32                    b_ih0 + b_hh0
                      w1s_ref,           # (2H, 4H) bf16                  stacked [W_ih1; W_hh1]
                      bias1_ref,         # (1, 4H) f32                    b_ih1 + b_hh1
                      w2_ref,            # (1, 2H) f32 if O==1 else (2H, O) f32   linear_2
                      b2_ref,            # (1, O) f32
                      out_ref,           # (bb, O) f32
                      g0_scr):           # (T, bb, 4H) scratch: hoisted layer-0 input gates
    T, bb, G = g0_scr.shape
    H = G // 4
    f32, bf16 = jnp.float32, jnp.bfloat16

    # ---------------- linear_1 + ReLU over every (timestep, batch row) at once ----------
    x = x_ref[...]                                            # (T*bb, IN)
    if x.shape[1] == 1:
        # input_size == 1: a K=1 matmul wastes an MXU pass -> VPU broadcast instead.
        y = jnp.maximum(x * w1_ref[...] + b1_ref[...], 0.0)                  # (T*bb, H)
    else:
        y = jnp.maximum(
            jnp.dot(x.astype(bf16), w1_ref[...], preferred_element_type=f32)
            + b1_ref[...], 0.0)

    # ------- layer-0 input-side gates hoisted out of the recurrence ---------------------
    # One large (T*bb, H) x (H, 4H) MXU matmul instead of T tiny K=32 matmuls.
    g0 = (jnp.dot(y.astype(bf16), wih0_ref[...], preferred_element_type=f32)
          + bias0_ref[...])                                   # (T*bb, 4H) f32
    # Single contiguous, sublane-aligned store (bb is a multiple of 8): no masked
    # partial stores, no per-t scatter loop.  Every slab is rewritten each grid
    # iteration, so the persistent scratch never leaks stale data across blocks.
    g0_scr[...] = g0.reshape(T, bb, G).astype(g0_scr.dtype)

    # Hoist recurrent weights out of the loop (loaded into vregs once).
    whh0 = whh0_ref[...]
    w1s = w1s_ref[...]
    bias1 = bias1_ref[...]

    def gate_update(gates, c):
        # PyTorch gate order along the 4H axis: i, f, g, o.
        # One full-vreg sigmoid + one full-vreg tanh over (bb, 4H), then lane slices.
        sg = jax.nn.sigmoid(gates)
        th = jnp.tanh(gates)
        i_g = sg[:, 0 * H:1 * H]
        f_g = sg[:, 1 * H:2 * H]
        g_g = th[:, 2 * H:3 * H]
        o_g = sg[:, 3 * H:4 * H]
        c_new = f_g * c + i_g * g_g
        h_new = o_g * jnp.tanh(c_new)
        return h_new, c_new

    # TODO(synk): weight-stationary MXU driving (pltpu.matmul_push_rhs / matmul_acc_lhs /
    # matmul_pop with whh0 / w1s resident across all T steps) would remove the per-step
    # RHS reload from the latency-bound recurrence; skipped here because the explicit
    # accumulator reset semantics are not portable across MRF (v5e/v6e) vs MRB (v7x).
    def step(t, state):
        # state: (bb, 4H) f32, lanes = [h0 | h1 | c0 | c1]  (one lane-dense tile per 8 rows)
        h0 = state[:, 0 * H:1 * H]
        h1 = state[:, 1 * H:2 * H]
        c0 = state[:, 2 * H:3 * H]
        c1 = state[:, 3 * H:4 * H]
        # Layer 0: input-side gates precomputed; only the recurrent dot remains.
        gates0 = g0_scr[t].astype(f32) + jnp.dot(h0.astype(bf16), whh0,
                                                 preferred_element_type=f32)
        h0n, c0n = gate_update(gates0, c0)
        # Layer 1 (input is layer-0 output at the same step, inherently sequential).
        xh = jnp.concatenate([h0n, h1], axis=-1).astype(bf16)                # (bb, 2H)
        gates1 = jnp.dot(xh, w1s, preferred_element_type=f32) + bias1
        h1n, c1n = gate_update(gates1, c1)
        return jnp.concatenate([h0n, h1n, c0n, c1n], axis=-1)                # repack carry

    state0 = jnp.zeros((bb, 4 * H), f32)
    # Full unroll only while T is small; partial unroll keeps scheduler visibility
    # without blowing up code size / carry live ranges for long sequences.
    unroll = True if T <= 32 else 8
    state = jax.lax.fori_loop(0, T, step, state0, unroll=unroll)

    # ---------------- linear_2 on h_n.permute(1,0,2).reshape(B,-1) = [h0 | h1] ----------
    # TODO(synk): nn.Dropout treated as identity (eval-mode semantics); no RNG masking.
    hcat = state[:, 0:2 * H]                                   # lanes 0:64, no data movement
    if w2_ref.shape[0] == 1:
        # output_size == 1: VPU multiply + cross-lane reduce; avoids two N=1 MXU dots.
        out = jnp.sum(hcat * w2_ref[...], axis=-1, keepdims=True) + b2_ref[...]
    else:
        out = jnp.dot(hcat, w2_ref[...], preferred_element_type=f32) + b2_ref[...]
    out_ref[...] = out.astype(out_ref.dtype)


# ----------------------------------------------------------------------------
# Wrapper (layout plumbing, weight transposes / stacking / casts, pallas_call)
# ----------------------------------------------------------------------------
def _choose_blocking(B, cap=256):
    """Pad batch to a sublane multiple and pick a batch-block size.

    cap ~ MXU M-dim class: 256 for v6e/v7x; pass 128 on v5e (4x 128x128 MXUs).
    Prefers >= 2 grid blocks when the padded batch allows it (v7x: 2 TensorCores/chip).
    """
    Bp = max(8, ((B + 7) // 8) * 8)                          # pad to a multiple of 8
    divisors = [d for d in range(8, min(Bp, cap) + 1, 8) if Bp % d == 0]
    bb = divisors[-1] if divisors else Bp
    if Bp // bb < 2 and Bp >= 16:
        halves = [d for d in divisors if Bp // d >= 2]
        if halves:
            bb = halves[-1]
    return Bp, bb


def lstm_model_forward(x, params, *, mxu_m_cap=256):
    """x: (B, T, IN) float32.  Batching many independent windows per call (larger B)
    is how the fixed per-call cost is amortized at these tiny shapes."""
    B, T, IN = x.shape
    H = params["w1"].shape[0]
    O = params["w2"].shape[0]

    Bp, bb = _choose_blocking(B, cap=mxu_m_cap)
    nb = Bp // bb

    f32, bf16 = jnp.float32, jnp.bfloat16

    # Zero-pad the batch to the padded/block-aligned size; pad rows are dropped at the end.
    x = x.astype(f32)
    if Bp != B:
        x = jnp.concatenate([x, jnp.zeros((Bp - B, T, IN), f32)], axis=0)

    # Batch-block-major layout; within a block, row t*bb + j = (timestep t, local batch j).
    xb = x.reshape(nb, bb, T, IN).transpose(0, 2, 1, 3).reshape(nb, T * bb, IN)

    # linear_1 weight: f32 for the IN==1 VPU-broadcast path, pre-cast bf16 otherwise.
    w1_arg = params["w1"].T.astype(f32 if IN == 1 else bf16)            # (IN, H)
    # Stack layer-1 weights once: [h0 | h1] @ [W_ih1^T ; W_hh1^T].
    w1s = jnp.concatenate([params["w_ih1"].T, params["w_hh1"].T], axis=0).astype(bf16)
    # linear_2: single (1, 2H) row for the O==1 VPU+reduce path, (2H, O) for MXU otherwise.
    w2_arg = params["w2"].astype(f32) if O == 1 else params["w2"].T.astype(f32)

    # Hoisted-gates scratch: f32 while small; bf16 once the footprint would crowd
    # v7x's 64 MiB (32 MiB scoped) VMEM (pre-activation input-side term only).
    g0_dtype = f32 if T * bb * 4 * H * 4 <= (8 << 20) else bf16

    inputs = (
        xb,
        w1_arg, params["b1"].reshape(1, H).astype(f32),
        params["w_ih0"].T.astype(bf16),
        params["w_hh0"].T.astype(bf16),
        (params["b_ih0"] + params["b_hh0"]).reshape(1, 4 * H).astype(f32),
        w1s,
        (params["b_ih1"] + params["b_hh1"]).reshape(1, 4 * H).astype(f32),
        w2_arg,
        params["b2"].reshape(1, O).astype(f32),
    )

    const2d = lambda i: (0, 0)
    grid_spec = pltpu.PrefetchScalarGridSpec(
        num_scalar_prefetch=0,
        grid=(nb,),                                   # batch blocks: parallel (v7x megacore)
        in_specs=[
            pl.BlockSpec((None, T * bb, IN), lambda i: (i, 0, 0)),   # x block (lead dim squeezed)
            pl.BlockSpec((IN, H), const2d),
            pl.BlockSpec((1, H), const2d),
            pl.BlockSpec((H, 4 * H), const2d),
            pl.BlockSpec((H, 4 * H), const2d),
            pl.BlockSpec((1, 4 * H), const2d),
            pl.BlockSpec((2 * H, 4 * H), const2d),
            pl.BlockSpec((1, 4 * H), const2d),
            pl.BlockSpec(w2_arg.shape, const2d),
            pl.BlockSpec((1, O), const2d),
        ],
        out_specs=pl.BlockSpec((bb, O), lambda i: (i, 0)),
        scratch_shapes=[pltpu.VMEM((T, bb, 4 * H), g0_dtype)],
    )

    out = pl.pallas_call(
        lstm_model_kernel,
        out_shape=jax.ShapeDtypeStruct((Bp, O), f32),
        grid_spec=grid_spec,
        compiler_params=pltpu.CompilerParams(
            dimension_semantics=("parallel",),
            vmem_limit_bytes=32 * 1024 * 1024,        # v5e scoped default is only 16 MiB
        ),
    )(*inputs)

    # drop batch padding, then predictions[:, -1]
    return out[:B, -1]


# ----------------------------------------------------------------------------
# Deterministic parameter init (mirrors LSTMModel.__init__ / init_weights shapes)
# ----------------------------------------------------------------------------
def init_params(key, input_size=1, hidden=32, num_layers=2, output_size=1):
    assert num_layers == 2
    keys = jax.random.split(key, 12)

    def linear_init(kw, kb, out_f, in_f):
        bound = 1.0 / math.sqrt(in_f)
        w = jax.random.uniform(kw, (out_f, in_f), jnp.float32, -bound, bound)
        b = jax.random.uniform(kb, (out_f,), jnp.float32, -bound, bound)
        return w, b

    def kaiming_normal(k, shape):          # fan_in = shape[1], gain = sqrt(2)
        return jax.random.normal(k, shape, jnp.float32) * math.sqrt(2.0 / shape[1])

    orth = jax.nn.initializers.orthogonal()

    w1, b1 = linear_init(keys[0], keys[1], hidden, input_size)                    # linear_1
    w2, b2 = linear_init(keys[2], keys[3], output_size, num_layers * hidden)      # linear_2

    return {
        "w1": w1, "b1": b1,
        # LSTM layer 0: input dim = hidden (output of linear_1)
        "w_ih0": kaiming_normal(keys[4], (4 * hidden, hidden)),
        "w_hh0": orth(keys[5], (4 * hidden, hidden), jnp.float32),
        "b_ih0": jnp.zeros((4 * hidden,), jnp.float32),
        "b_hh0": jnp.zeros((4 * hidden,), jnp.float32),
        # LSTM layer 1
        "w_ih1": kaiming_normal(keys[6], (4 * hidden, hidden)),
        "w_hh1": orth(keys[7], (4 * hidden, hidden), jnp.float32),
        "b_ih1": jnp.zeros((4 * hidden,), jnp.float32),
        "b_hh1": jnp.zeros((4 * hidden,), jnp.float32),
        "w2": w2, "b2": b2,
    }


if __name__ == "__main__":
    key = jax.random.PRNGKey(0)
    kx, kp = jax.random.split(key)

    B, T, IN = 2, 8, 1          # small shapes consistent with the module (window of scalars)
    x = jax.random.normal(kx, (B, T, IN), dtype=jnp.float32)
    params = init_params(kp, input_size=IN, hidden=32, num_layers=2, output_size=1)

    pred = lstm_model_forward(x, params)
    pred = jax.block_until_ready(pred)
    assert pred.shape == (B,), pred.shape
    assert bool(jnp.all(jnp.isfinite(pred)))
    print("KERNEL_OK")
</pallas_src>

<mosaic_0001>
module attributes {stable_mosaic.version = 11 : i64} {
  func.func @lstm_model_kernel(%arg0: i32, %arg1: memref<1x64x1xf32, #tpu.memory_space<vmem>>, %arg2: memref<1x32xf32, #tpu.memory_space<vmem>>, %arg3: memref<1x32xf32, #tpu.memory_space<vmem>>, %arg4: memref<32x128xbf16, #tpu.memory_space<vmem>>, %arg5: memref<32x128xbf16, #tpu.memory_space<vmem>>, %arg6: memref<1x128xf32, #tpu.memory_space<vmem>>, %arg7: memref<64x128xbf16, #tpu.memory_space<vmem>>, %arg8: memref<1x128xf32, #tpu.memory_space<vmem>>, %arg9: memref<1x64xf32, #tpu.memory_space<vmem>>, %arg10: memref<1x1xf32, #tpu.memory_space<vmem>>, %arg11: memref<8x1xf32, #tpu.memory_space<vmem>>, %arg12: memref<8x8x128xf32, #tpu.memory_space<vmem>>) attributes {dimension_semantics = [#tpu.dimension_semantics<parallel>], iteration_bounds = array<i64: 1>, scalar_prefetch = 0 : i64, scratch_operands = 1 : i64, tpu.core_type = #tpu.core_type<tc>, window_params = [{transform_indices = @transform_0, window_bounds = array<i64: 1, 64, 1>}, {pipeline_mode = #tpu.pipeline_mode<synchronous>, transform_indices = @transform_1, window_bounds = array<i64: 1, 32>}, {pipeline_mode = #tpu.pipeline_mode<synchronous>, transform_indices = @transform_2, window_bounds = array<i64: 1, 32>}, {pipeline_mode = #tpu.pipeline_mode<synchronous>, transform_indices = @transform_3, window_bounds = array<i64: 32, 128>}, {pipeline_mode = #tpu.pipeline_mode<synchronous>, transform_indices = @transform_4, window_bounds = array<i64: 32, 128>}, {pipeline_mode = #tpu.pipeline_mode<synchronous>, transform_indices = @transform_5, window_bounds = array<i64: 1, 128>}, {pipeline_mode = #tpu.pipeline_mode<synchronous>, transform_indices = @transform_6, window_bounds = array<i64: 64, 128>}, {pipeline_mode = #tpu.pipeline_mode<synchronous>, transform_indices = @transform_7, window_bounds = array<i64: 1, 128>}, {pipeline_mode = #tpu.pipeline_mode<synchronous>, transform_indices = @transform_8, window_bounds = array<i64: 1, 64>}, {pipeline_mode = #tpu.pipeline_mode<synchronous>, transform_indices = @transform_9, window_bounds = array<i64: 1, 1>}, {transform_indices = @transform_10, window_bounds = array<i64: 8, 1>}]} {
    %c0 = arith.constant 0 : index
    %c0_0 = arith.constant 0 : index
    %c0_1 = arith.constant 0 : index
    %0 = vector.load %arg1[%c0, %c0_0, %c0_1] : memref<1x64x1xf32, #tpu.memory_space<vmem>>, vector<1x64x1xf32>
    %1 = vector.shape_cast %0 : vector<1x64x1xf32> to vector<64x1xf32>
    %c0_2 = arith.constant 0 : index
    %c0_3 = arith.constant 0 : index
    %2 = vector.load %arg2[%c0_2, %c0_3] : memref<1x32xf32, #tpu.memory_space<vmem>>, vector<1x32xf32>
    %3 = vector.broadcast %1 : vector<64x1xf32> to vector<64x32xf32>
    %4 = vector.broadcast %2 : vector<1x32xf32> to vector<64x32xf32>
    %5 = arith.mulf %3, %4 : vector<64x32xf32>
    %c0_4 = arith.constant 0 : index
    %c0_5 = arith.constant 0 : index
    %6 = vector.load %arg3[%c0_4, %c0_5] : memref<1x32xf32, #tpu.memory_space<vmem>>, vector<1x32xf32>
    %7 = vector.broadcast %6 : vector<1x32xf32> to vector<64x32xf32>
    %8 = arith.addf %5, %7 : vector<64x32xf32>
    %cst = arith.constant 0.000000e+00 : f32
    %9 = vector.broadcast %cst : f32 to vector<64x32xf32>
    %10 = arith.maximumf %8, %9 : vector<64x32xf32>
    %11 = arith.truncf %10 : vector<64x32xf32> to vector<64x32xbf16>
    %c0_6 = arith.constant 0 : index
    %c0_7 = arith.constant 0 : index
    %12 = vector.load %arg4[%c0_6, %c0_7] : memref<32x128xbf16, #tpu.memory_space<vmem>>, vector<32x128xbf16>
    %cst_8 = arith.constant dense<0.000000e+00> : vector<64x128xf32>
    %13 = tpu.matmul %11, %12, %cst_8 {dimension_numbers = #tpu.dot_dimension_numbers<[1], [0], [0], [1], [0, 0, 1, 1], [], []>} : vector<64x32xbf16>, vector<32x128xbf16>, vector<64x128xf32> -> vector<64x128xf32>
    %c0_9 = arith.constant 0 : index
    %c0_10 = arith.constant 0 : index
    %14 = vector.load %arg6[%c0_9, %c0_10] : memref<1x128xf32, #tpu.memory_space<vmem>>, vector<1x128xf32>
    %15 = vector.broadcast %14 : vector<1x128xf32> to vector<64x128xf32>
    %16 = arith.addf %13, %15 : vector<64x128xf32>
    %17 = vector.shape_cast %16 : vector<64x128xf32> to vector<8x8x128xf32>
    %c0_11 = arith.constant 0 : index
    %c0_12 = arith.constant 0 : index
    %c0_13 = arith.constant 0 : index
    %18 = vector.load %arg12[%c0_11, %c0_12, %c0_13] : memref<8x8x128xf32, #tpu.memory_space<vmem>>, vector<8x8x128xf32>
    tpu.vector_store %arg12[%c0_11, %c0_12, %c0_13], %17 {strides = array<i32>} : memref<8x8x128xf32, #tpu.memory_space<vmem>>, vector<8x8x128xf32>,
    %c0_14 = arith.constant 0 : index
    %c0_15 = arith.constant 0 : index
    %19 = vector.load %arg5[%c0_14, %c0_15] : memref<32x128xbf16, #tpu.memory_space<vmem>>, vector<32x128xbf16>
    %c0_16 = arith.constant 0 : index
    %c0_17 = arith.constant 0 : index
    %20 = vector.load %arg7[%c0_16, %c0_17] : memref<64x128xbf16, #tpu.memory_space<vmem>>, vector<64x128xbf16>
    %c0_18 = arith.constant 0 : index
    %c0_19 = arith.constant 0 : index
    %21 = vector.load %arg8[%c0_18, %c0_19] : memref<1x128xf32, #tpu.memory_space<vmem>>, vector<1x128xf32>
    %cst_20 = arith.constant 0.000000e+00 : f32
    %22 = vector.broadcast %cst_20 : f32 to vector<8x128xf32>
    %c0_i32 = arith.constant 0 : i32
    %23 = vector.extract_strided_slice %22 {offsets = [0, 0], sizes = [8, 32], strides = [1, 1]} : vector<8x128xf32> to vector<8x32xf32>
    %24 = vector.extract_strided_slice %22 {offsets = [0, 32], sizes = [8, 32], strides = [1, 1]} : vector<8x128xf32> to vector<8x32xf32>
    %25 = vector.extract_strided_slice %22 {offsets = [0, 64], sizes = [8, 32], strides = [1, 1]} : vector<8x128xf32> to vector<8x32xf32>
    %26 = vector.extract_strided_slice %22 {offsets = [0, 96], sizes = [8, 32], strides = [1, 1]} : vector<8x128xf32> to vector<8x32xf32>
    %27 = arith.index_cast %c0_i32 : i32 to index
    %c0_21 = arith.constant 0 : index
    %c0_22 = arith.constant 0 : index
    %28 = vector.load %arg12[%27, %c0_21, %c0_22] : memref<8x8x128xf32, #tpu.memory_space<vmem>>, vector<1x8x128xf32>
    %29 = vector.shape_cast %28 : vector<1x8x128xf32> to vector<8x128xf32>
    %30 = arith.truncf %23 : vector<8x32xf32> to vector<8x32xbf16>
    %cst_23 = arith.constant dense<0.000000e+00> : vector<8x128xf32>
    %31 = tpu.matmul %30, %19, %cst_23 {dimension_numbers = #tpu.dot_dimension_numbers<[1], [0], [0], [1], [0, 0, 1, 1], [], []>} : vector<8x32xbf16>, vector<32x128xbf16>, vector<8x128xf32> -> vector<8x128xf32>
    %32 = arith.addf %29, %31 : vector<8x128xf32>
    %33 = arith.negf %32 : vector<8x128xf32>
    %34 = math.exp %33 : vector<8x128xf32>
    %cst_24 = arith.constant 1.000000e+00 : f32
    %35 = vector.broadcast %cst_24 : f32 to vector<8x128xf32>
    %36 = arith.addf %35, %34 : vector<8x128xf32>
    %37 = arith.divf %35, %36 : vector<8x128xf32>
    %38 = math.tanh %32 : vector<8x128xf32>
    %39 = vector.extract_strided_slice %37 {offsets = [0, 0], sizes = [8, 32], strides = [1, 1]} : vector<8x128xf32> to vector<8x32xf32>
    %40 = vector.extract_strided_slice %37 {offsets = [0, 32], sizes = [8, 32], strides = [1, 1]} : vector<8x128xf32> to vector<8x32xf32>
    %41 = vector.extract_strided_slice %38 {offsets = [0, 64], sizes = [8, 32], strides = [1, 1]} : vector<8x128xf32> to vector<8x32xf32>
    %42 = vector.extract_strided_slice %37 {offsets = [0, 96], sizes = [8, 32], strides = [1, 1]} : vector<8x128xf32> to vector<8x32xf32>
    %43 = arith.mulf %40, %25 : vector<8x32xf32>
    %44 = arith.mulf %39, %41 : vector<8x32xf32>
    %45 = arith.addf %43, %44 : vector<8x32xf32>
    %46 = math.tanh %45 : vector<8x32xf32>
    %47 = arith.mulf %42, %46 : vector<8x32xf32>
    %48 = tpu.concatenate %47, %24 in 1 : vector<8x32xf32>, vector<8x32xf32> -> vector<8x64xf32>
    %49 = arith.truncf %48 : vector<8x64xf32> to vector<8x64xbf16>
    %cst_25 = arith.constant dense<0.000000e+00> : vector<8x128xf32>
    %50 = tpu.matmul %49, %20, %cst_25 {dimension_numbers = #tpu.dot_dimension_numbers<[1], [0], [0], [1], [0, 0, 1, 1], [], []>} : vector<8x64xbf16>, vector<64x128xbf16>, vector<8x128xf32> -> vector<8x128xf32>
    %51 = vector.broadcast %21 : vector<1x128xf32> to vector<8x128xf32>
    %52 = arith.addf %50, %51 : vector<8x128xf32>
    %53 = arith.negf %52 : vector<8x128xf32>
    %54 = math.exp %53 : vector<8x128xf32>
    %cst_26 = arith.constant 1.000000e+00 : f32
    %55 = vector.broadcast %cst_26 : f32 to vector<8x128xf32>
    %56 = arith.addf %55, %54 : vector<8x128xf32>
    %57 = arith.divf %55, %56 : vector<8x128xf32>
    %58 = math.tanh %52 : vector<8x128xf32>
    %59 = vector.extract_strided_slice %57 {offsets = [0, 0], sizes = [8, 32], strides = [1, 1]} : vector<8x128xf32> to vector<8x32xf32>
    %60 = vector.extract_strided_slice %57 {offsets = [0, 32], sizes = [8, 32], strides = [1, 1]} : vector<8x128xf32> to vector<8x32xf32>
    %61 = vector.extract_strided_slice %58 {offsets = [0, 64], sizes = [8, 32], strides = [1, 1]} : vector<8x128xf32> to vector<8x32xf32>
    %62 = vector.extract_strided_slice %57 {offsets = [0, 96], sizes = [8, 32], strides = [1, 1]} : vector<8x128xf32> to vector<8x32xf32>
    %63 = arith.mulf %60, %26 : vector<8x32xf32>
    %64 = arith.mulf %59, %61 : vector<8x32xf32>
    %65 = arith.addf %63, %64 : vector<8x32xf32>
    %66 = math.tanh %65 : vector<8x32xf32>
    %67 = arith.mulf %62, %66 : vector<8x32xf32>
    %68 = tpu.concatenate %47, %67, %45, %65 in 1 : vector<8x32xf32>, vector<8x32xf32>, vector<8x32xf32>, vector<8x32xf32> -> vector<8x128xf32>
    %c1_i32 = arith.constant 1 : i32
    %69 = vector.extract_strided_slice %68 {offsets = [0, 0], sizes = [8, 32], strides = [1, 1]} : vector<8x128xf32> to vector<8x32xf32>
    %70 = vector.extract_strided_slice %68 {offsets = [0, 32], sizes = [8, 32], strides = [1, 1]} : vector<8x128xf32> to vector<8x32xf32>
    %71 = vector.extract_strided_slice %68 {offsets = [0, 64], sizes = [8, 32], strides = [1, 1]} : vector<8x128xf32> to vector<8x32xf32>
    %72 = vector.extract_strided_slice %68 {offsets = [0, 96], sizes = [8, 32], strides = [1, 1]} : vector<8x128xf32> to vector<8x32xf32>
    %73 = arith.index_cast %c1_i32 : i32 to index
    %c0_27 = arith.constant 0 : index
    %c0_28 = arith.constant 0 : index
    %74 = vector.load %arg12[%73, %c0_27, %c0_28] : memref<8x8x128xf32, #tpu.memory_space<vmem>>, vector<1x8x128xf32>
    %75 = vector.shape_cast %74 : vector<1x8x128xf32> to vector<8x128xf32>
    %76 = arith.truncf %69 : vector<8x32xf32> to vector<8x32xbf16>
    %cst_29 = arith.constant dense<0.000000e+00> : vector<8x128xf32>
    %77 = tpu.matmul %76, %19, %cst_29 {dimension_numbers = #tpu.dot_dimension_numbers<[1], [0], [0], [1], [0, 0, 1, 1], [], []>} : vector<8x32xbf16>, vector<32x128xbf16>, vector<8x128xf32> -> vector<8x128xf32>
    %78 = arith.addf %75, %77 : vector<8x128xf32>
    %79 = arith.negf %78 : vector<8x128xf32>
    %80 = math.exp %79 : vector<8x128xf32>
    %cst_30 = arith.constant 1.000000e+00 : f32
    %81 = vector.broadcast %cst_30 : f32 to vector<8x128xf32>
    %82 = arith.addf %81, %80 : vector<8x128xf32>
    %83 = arith.divf %81, %82 : vector<8x128xf32>
    %84 = math.tanh %78 : vector<8x128xf32>
    %85 = vector.extract_strided_slice %83 {offsets = [0, 0], sizes = [8, 32], strides = [1, 1]} : vector<8x128xf32> to vector<8x32xf32>
    %86 = vector.extract_strided_slice %83 {offsets = [0, 32], sizes = [8, 32], strides = [1, 1]} : vector<8x128xf32> to vector<8x32xf32>
    %87 = vector.extract_strided_slice %84 {offsets = [0, 64], sizes = [8, 32], strides = [1, 1]} : vector<8x128xf32> to vector<8x32xf32>
    %88 = vector.extract_strided_slice %83 {offsets = [0, 96], sizes = [8, 32], strides = [1, 1]} : vector<8x128xf32> to vector<8x32xf32>
    %89 = arith.mulf %86, %71 : vector<8x32xf32>
    %90 = arith.mulf %85, %87 : vector<8x32xf32>
    %91 = arith.addf %89, %90 : vector<8x32xf32>
    %92 = math.tanh %91 : vector<8x32xf32>
    %93 = arith.mulf %88, %92 : vector<8x32xf32>
    %94 = tpu.concatenate %93, %70 in 1 : vector<8x32xf32>, vector<8x32xf32> -> vector<8x64xf32>
    %95 = arith.truncf %94 : vector<8x64xf32> to vector<8x64xbf16>
    %cst_31 = arith.constant dense<0.000000e+00> : vector<8x128xf32>
    %96 = tpu.matmul %95, %20, %cst_31 {dimension_numbers = #tpu.dot_dimension_numbers<[1], [0], [0], [1], [0, 0, 1, 1], [], []>} : vector<8x64xbf16>, vector<64x128xbf16>, vector<8x128xf32> -> vector<8x128xf32>
    %97 = vector.broadcast %21 : vector<1x128xf32> to vector<8x128xf32>
    %98 = arith.addf %96, %97 : vector<8x128xf32>
    %99 = arith.negf %98 : vector<8x128xf32>
    %100 = math.exp %99 : vector<8x128xf32>
    %cst_32 = arith.constant 1.000000e+00 : f32
    %101 = vector.broadcast %cst_32 : f32 to vector<8x128xf32>
    %102 = arith.addf %101, %100 : vector<8x128xf32>
    %103 = arith.divf %101, %102 : vector<8x128xf32>
    %104 = math.tanh %98 : vector<8x128xf32>
    %105 = vector.extract_strided_slice %103 {offsets = [0, 0], sizes = [8, 32], strides = [1, 1]} : vector<8x128xf32> to vector<8x32xf32>
    %106 = vector.extract_strided_slice %103 {offsets = [0, 32], sizes = [8, 32], strides = [1, 1]} : vector<8x128xf32> to vector<8x32xf32>
    %107 = vector.extract_strided_slice %104 {offsets = [0, 64], sizes = [8, 32], strides = [1, 1]} : vector<8x128xf32> to vector<8x32xf32>
    %108 = vector.extract_strided_slice %103 {offsets = [0, 96], sizes = [8, 32], strides = [1, 1]} : vector<8x128xf32> to vector<8x32xf32>
    %109 = arith.mulf %106, %72 : vector<8x32xf32>
    %110 = arith.mulf %105, %107 : vector<8x32xf32>
    %111 = arith.addf %109, %110 : vector<8x32xf32>
    %112 = math.tanh %111 : vector<8x32xf32>
    %113 = arith.mulf %108, %112 : vector<8x32xf32>
    %114 = tpu.concatenate %93, %113, %91, %111 in 1 : vector<8x32xf32>, vector<8x32xf32>, vector<8x32xf32>, vector<8x32xf32> -> vector<8x128xf32>
    %c2_i32 = arith.constant 2 : i32
    %115 = vector.extract_strided_slice %114 {offsets = [0, 0], sizes = [8, 32], strides = [1, 1]} : vector<8x128xf32> to vector<8x32xf32>
    %116 = vector.extract_strided_slice %114 {offsets = [0, 32], sizes = [8, 32], strides = [1, 1]} : vector<8x128xf32> to vector<8x32xf32>
    %117 = vector.extract_strided_slice %114 {offsets = [0, 64], sizes = [8, 32], strides = [1, 1]} : vector<8x128xf32> to vector<8x32xf32>
    %118 = vector.extract_strided_slice %114 {offsets = [0, 96], sizes = [8, 32], strides = [1, 1]} : vector<8x128xf32> to vector<8x32xf32>
    %119 = arith.index_cast %c2_i32 : i32 to index
    %c0_33 = arith.constant 0 : index
    %c0_34 = arith.constant 0 : index
    %120 = vector.load %arg12[%119, %c0_33, %c0_34] : memref<8x8x128xf32, #tpu.memory_space<vmem>>, vector<1x8x128xf32>
    %121 = vector.shape_cast %120 : vector<1x8x128xf32> to vector<8x128xf32>
    %122 = arith.truncf %115 : vector<8x32xf32> to vector<8x32xbf16>
    %cst_35 = arith.constant dense<0.000000e+00> : vector<8x128xf32>
    %123 = tpu.matmul %122, %19, %cst_35 {dimension_numbers = #tpu.dot_dimension_numbers<[1], [0], [0], [1], [0, 0, 1, 1], [], []>} : vector<8x32xbf16>, vector<32x128xbf16>, vector<8x128xf32> -> vector<8x128xf32>
    %124 = arith.addf %121, %123 : vector<8x128xf32>
    %125 = arith.negf %124 : vector<8x128xf32>
    %126 = math.exp %125 : vector<8x128xf32>
    %cst_36 = arith.constant 1.000000e+00 : f32
    %127 = vector.broadcast %cst_36 : f32 to vector<8x128xf32>
    %128 = arith.addf %127, %126 : vector<8x128xf32>
    %129 = arith.divf %127, %128 : vector<8x128xf32>
    %130 = math.tanh %124 : vector<8x128xf32>
    %131 = vector.extract_strided_slice %129 {offsets = [0, 0], sizes = [8, 32], strides = [1, 1]} : vector<8x128xf32> to vector<8x32xf32>
    %132 = vector.extract_strided_slice %129 {offsets = [0, 32], sizes = [8, 32], strides = [1, 1]} : vector<8x128xf32> to vector<8x32xf32>
    %133 = vector.extract_strided_slice %130 {offsets = [0, 64], sizes = [8, 32], strides = [1, 1]} : vector<8x128xf32> to vector<8x32xf32>
    %134 = vector.extract_strided_slice %129 {offsets = [0, 96], sizes = [8, 32], strides = [1, 1]} : vector<8x128xf32> to vector<8x32xf32>
    %135 = arith.mulf %132, %117 : vector<8x32xf32>
    %136 = arith.mulf %131, %133 : vector<8x32xf32>
    %137 = arith.addf %135, %136 : vector<8x32xf32>
    %138 = math.tanh %137 : vector<8x32xf32>
    %139 = arith.mulf %134, %138 : vector<8x32xf32>
    %140 = tpu.concatenate %139, %116 in 1 : vector<8x32xf32>, vector<8x32xf32> -> vector<8x64xf32>
    %141 = arith.truncf %140 : vector<8x64xf32> to vector<8x64xbf16>
    %cst_37 = arith.constant dense<0.000000e+00> : vector<8x128xf32>
    %142 = tpu.matmul %141, %20, %cst_37 {dimension_numbers = #tpu.dot_dimension_numbers<[1], [0], [0], [1], [0, 0, 1, 1], [], []>} : vector<8x64xbf16>, vector<64x128xbf16>, vector<8x128xf32> -> vector<8x128xf32>
    %143 = vector.broadcast %21 : vector<1x128xf32> to vector<8x128xf32>
    %144 = arith.addf %142, %143 : vector<8x128xf32>
    %145 = arith.negf %144 : vector<8x128xf32>
    %146 = math.exp %145 : vector<8x128xf32>
    %cst_38 = arith.constant 1.000000e+00 : f32
    %147 = vector.broadcast %cst_38 : f32 to vector<8x128xf32>
    %148 = arith.addf %147, %146 : vector<8x128xf32>
    %149 = arith.divf %147, %148 : vector<8x128xf32>
    %150 = math.tanh %144 : vector<8x128xf32>
    %151 = vector.extract_strided_slice %149 {offsets = [0, 0], sizes = [8, 32], strides = [1, 1]} : vector<8x128xf32> to vector<8x32xf32>
    %152 = vector.extract_strided_slice %149 {offsets = [0, 32], sizes = [8, 32], strides = [1, 1]} : vector<8x128xf32> to vector<8x32xf32>
    %153 = vector.extract_strided_slice %150 {offsets = [0, 64], sizes = [8, 32], strides = [1, 1]} : vector<8x128xf32> to vector<8x32xf32>
    %154 = vector.extract_strided_slice %149 {offsets = [0, 96], sizes = [8, 32], strides = [1, 1]} : vector<8x128xf32> to vector<8x32xf32>
    %155 = arith.mulf %152, %118 : vector<8x32xf32>
    %156 = arith.mulf %151, %153 : vector<8x32xf32>
    %157 = arith.addf %155, %156 : vector<8x32xf32>
    %158 = math.tanh %157 : vector<8x32xf32>
    %159 = arith.mulf %154, %158 : vector<8x32xf32>
    %160 = tpu.concatenate %139, %159, %137, %157 in 1 : vector<8x32xf32>, vector<8x32xf32>, vector<8x32xf32>, vector<8x32xf32> -> vector<8x128xf32>
    %c3_i32 = arith.constant 3 : i32
    %161 = vector.extract_strided_slice %160 {offsets = [0, 0], sizes = [8, 32], strides = [1, 1]} : vector<8x128xf32> to vector<8x32xf32>
    %162 = vector.extract_strided_slice %160 {offsets = [0, 32], sizes = [8, 32], strides = [1, 1]} : vector<8x128xf32> to vector<8x32xf32>
    %163 = vector.extract_strided_slice %160 {offsets = [0, 64], sizes = [8, 32], strides = [1, 1]} : vector<8x128xf32> to vector<8x32xf32>
    %164 = vector.extract_strided_slice %160 {offsets = [0, 96], sizes = [8, 32], strides = [1, 1]} : vector<8x128xf32> to vector<8x32xf32>
    %165 = arith.index_cast %c3_i32 : i32 to index
    %c0_39 = arith.constant 0 : index
    %c0_40 = arith.constant 0 : index
    %166 = vector.load %arg12[%165, %c0_39, %c0_40] : memref<8x8x128xf32, #tpu.memory_space<vmem>>, vector<1x8x128xf32>
    %167 = vector.shape_cast %166 : vector<1x8x128xf32> to vector<8x128xf32>
    %168 = arith.truncf %161 : vector<8x32xf32> to vector<8x32xbf16>
    %cst_41 = arith.constant dense<0.000000e+00> : vector<8x128xf32>
    %169 = tpu.matmul %168, %19, %cst_41 {dimension_numbers = #tpu.dot_dimension_numbers<[1], [0], [0], [1], [0, 0, 1, 1], [], []>} : vector<8x32xbf16>, vector<32x128xbf16>, vector<8x128xf32> -> vector<8x128xf32>
    %170 = arith.addf %167, %169 : vector<8x128xf32>
    %171 = arith.negf %170 : vector<8x128xf32>
    %172 = math.exp %171 : vector<8x128xf32>
    %cst_42 = arith.constant 1.000000e+00 : f32
    %173 = vector.broadcast %cst_42 : f32 to vector<8x128xf32>
    %174 = arith.addf %173, %172 : vector<8x128xf32>
    %175 = arith.divf %173, %174 : vector<8x128xf32>
    %176 = math.tanh %170 : vector<8x128xf32>
    %177 = vector.extract_strided_slice %175 {offsets = [0, 0], sizes = [8, 32], strides = [1, 1]} : vector<8x128xf32> to vector<8x32xf32>
    %178 = vector.extract_strided_slice %175 {offsets = [0, 32], sizes = [8, 32], strides = [1, 1]} : vector<8x128xf32> to vector<8x32xf32>
    %179 = vector.extract_strided_slice %176 {offsets = [0, 64], sizes = [8, 32], strides = [1, 1]} : vector<8x128xf32> to vector<8x32xf32>
    %180 = vector.extract_strided_slice %175 {offsets = [0, 96], sizes = [8, 32], strides = [1, 1]} : vector<8x128xf32> to vector<8x32xf32>
    %181 = arith.mulf %178, %163 : vector<8x32xf32>
    %182 = arith.mulf %177, %179 : vector<8x32xf32>
    %183 = arith.addf %181, %182 : vector<8x32xf32>
    %184 = math.tanh %183 : vector<8x32xf32>
    %185 = arith.mulf %180, %184 : vector<8x32xf32>
    %186 = tpu.concatenate %185, %162 in 1 : vector<8x32xf32>, vector<8x32xf32> -> vector<8x64xf32>
    %187 = arith.truncf %186 : vector<8x64xf32> to vector<8x64xbf16>
    %cst_43 = arith.constant dense<0.000000e+00> : vector<8x128xf32>
    %188 = tpu.matmul %187, %20, %cst_43 {dimension_numbers = #tpu.dot_dimension_numbers<[1], [0], [0], [1], [0, 0, 1, 1], [], []>} : vector<8x64xbf16>, vector<64x128xbf16>, vector<8x128xf32> -> vector<8x128xf32>
    %189 = vector.broadcast %21 : vector<1x128xf32> to vector<8x128xf32>
    %190 = arith.addf %188, %189 : vector<8x128xf32>
    %191 = arith.negf %190 : vector<8x128xf32>
    %192 = math.exp %191 : vector<8x128xf32>
    %cst_44 = arith.constant 1.000000e+00 : f32
    %193 = vector.broadcast %cst_44 : f32 to vector<8x128xf32>
    %194 = arith.addf %193, %192 : vector<8x128xf32>
    %195 = arith.divf %193, %194 : vector<8x128xf32>
    %196 = math.tanh %190 : vector<8x128xf32>
    %197 = vector.extract_strided_slice %195 {offsets = [0, 0], sizes = [8, 32], strides = [1, 1]} : vector<8x128xf32> to vector<8x32xf32>
    %198 = vector.extract_strided_slice %195 {offsets = [0, 32], sizes = [8, 32], strides = [1, 1]} : vector<8x128xf32> to vector<8x32xf32>
    %199 = vector.extract_strided_slice %196 {offsets = [0, 64], sizes = [8, 32], strides = [1, 1]} : vector<8x128xf32> to vector<8x32xf32>
    %200 = vector.extract_strided_slice %195 {offsets = [0, 96], sizes = [8, 32], strides = [1, 1]} : vector<8x128xf32> to vector<8x32xf32>
    %201 = arith.mulf %198, %164 : vector<8x32xf32>
    %202 = arith.mulf %197, %199 : vector<8x32xf32>
    %203 = arith.addf %201, %202 : vector<8x32xf32>
    %204 = math.tanh %203 : vector<8x32xf32>
    %205 = arith.mulf %200, %204 : vector<8x32xf32>
    %206 = tpu.concatenate %185, %205, %183, %203 in 1 : vector<8x32xf32>, vector<8x32xf32>, vector<8x32xf32>, vector<8x32xf32> -> vector<8x128xf32>
    %c4_i32 = arith.constant 4 : i32
    %207 = vector.extract_strided_slice %206 {offsets = [0, 0], sizes = [8, 32], strides = [1, 1]} : vector<8x128xf32> to vector<8x32xf32>
    %208 = vector.extract_strided_slice %206 {offsets = [0, 32], sizes = [8, 32], strides = [1, 1]} : vector<8x128xf32> to vector<8x32xf32>
    %209 = vector.extract_strided_slice %206 {offsets = [0, 64], sizes = [8, 32], strides = [1, 1]} : vector<8x128xf32> to vector<8x32xf32>
    %210 = vector.extract_strided_slice %206 {offsets = [0, 96], sizes = [8, 32], strides = [1, 1]} : vector<8x128xf32> to vector<8x32xf32>
    %211 = arith.index_cast %c4_i32 : i32 to index
    %c0_45 = arith.constant 0 : index
    %c0_46 = arith.constant 0 : index
    %212 = vector.load %arg12[%211, %c0_45, %c0_46] : memref<8x8x128xf32, #tpu.memory_space<vmem>>, vector<1x8x128xf32>
    %213 = vector.shape_cast %212 : vector<1x8x128xf32> to vector<8x128xf32>
    %214 = arith.truncf %207 : vector<8x32xf32> to vector<8x32xbf16>
    %cst_47 = arith.constant dense<0.000000e+00> : vector<8x128xf32>
    %215 = tpu.matmul %214, %19, %cst_47 {dimension_numbers = #tpu.dot_dimension_numbers<[1], [0], [0], [1], [0, 0, 1, 1], [], []>} : vector<8x32xbf16>, vector<32x128xbf16>, vector<8x128xf32> -> vector<8x128xf32>
    %216 = arith.addf %213, %215 : vector<8x128xf32>
    %217 = arith.negf %216 : vector<8x128xf32>
    %218 = math.exp %217 : vector<8x128xf32>
    %cst_48 = arith.constant 1.000000e+00 : f32
    %219 = vector.broadcast %cst_48 : f32 to vector<8x128xf32>
    %220 = arith.addf %219, %218 : vector<8x128xf32>
    %221 = arith.divf %219, %220 : vector<8x128xf32>
    %222 = math.tanh %216 : vector<8x128xf32>
    %223 = vector.extract_strided_slice %221 {offsets = [0, 0], sizes = [8, 32], strides = [1, 1]} : vector<8x128xf32> to vector<8x32xf32>
    %224 = vector.extract_strided_slice %221 {offsets = [0, 32], sizes = [8, 32], strides = [1, 1]} : vector<8x128xf32> to vector<8x32xf32>
    %225 = vector.extract_strided_slice %222 {offsets = [0, 64], sizes = [8, 32], strides = [1, 1]} : vector<8x128xf32> to vector<8x32xf32>
    %226 = vector.extract_strided_slice %221 {offsets = [0, 96], sizes = [8, 32], strides = [1, 1]} : vector<8x128xf32> to vector<8x32xf32>
    %227 = arith.mulf %224, %209 : vector<8x32xf32>
    %228 = arith.mulf %223, %225 : vector<8x32xf32>
    %229 = arith.addf %227, %228 : vector<8x32xf32>
    %230 = math.tanh %229 : vector<8x32xf32>
    %231 = arith.mulf %226, %230 : vector<8x32xf32>
    %232 = tpu.concatenate %231, %208 in 1 : vector<8x32xf32>, vector<8x32xf32> -> vector<8x64xf32>
    %233 = arith.truncf %232 : vector<8x64xf32> to vector<8x64xbf16>
    %cst_49 = arith.constant dense<0.000000e+00> : vector<8x128xf32>
    %234 = tpu.matmul %233, %20, %cst_49 {dimension_numbers = #tpu.dot_dimension_numbers<[1], [0], [0], [1], [0, 0, 1, 1], [], []>} : vector<8x64xbf16>, vector<64x128xbf16>, vector<8x128xf32> -> vector<8x128xf32>
    %235 = vector.broadcast %21 : vector<1x128xf32> to vector<8x128xf32>
    %236 = arith.addf %234, %235 : vector<8x128xf32>
    %237 = arith.negf %236 : vector<8x128xf32>
    %238 = math.exp %237 : vector<8x128xf32>
    %cst_50 = arith.constant 1.000000e+00 : f32
    %239 = vector.broadcast %cst_50 : f32 to vector<8x128xf32>
    %240 = arith.addf %239, %238 : vector<8x128xf32>
    %241 = arith.divf %239, %240 : vector<8x128xf32>
    %242 = math.tanh %236 : vector<8x128xf32>
    %243 = vector.extract_strided_slice %241 {offsets = [0, 0], sizes = [8, 32], strides = [1, 1]} : vector<8x128xf32> to vector<8x32xf32>
    %244 = vector.extract_strided_slice %241 {offsets = [0, 32], sizes = [8, 32], strides = [1, 1]} : vector<8x128xf32> to vector<8x32xf32>
    %245 = vector.extract_strided_slice %242 {offsets = [0, 64], sizes = [8, 32], strides = [1, 1]} : vector<8x128xf32> to vector<8x32xf32>
    %246 = vector.extract_strided_slice %241 {offsets = [0, 96], sizes = [8, 32], strides = [1, 1]} : vector<8x128xf32> to vector<8x32xf32>
    %247 = arith.mulf %244, %210 : vector<8x32xf32>
    %248 = arith.mulf %243, %245 : vector<8x32xf32>
    %249 = arith.addf %247, %248 : vector<8x32xf32>
    %250 = math.tanh %249 : vector<8x32xf32>
    %251 = arith.mulf %246, %250 : vector<8x32xf32>
    %252 = tpu.concatenate %231, %251, %229, %249 in 1 : vector<8x32xf32>, vector<8x32xf32>, vector<8x32xf32>, vector<8x32xf32> -> vector<8x128xf32>
    %c5_i32 = arith.constant 5 : i32
    %253 = vector.extract_strided_slice %252 {offsets = [0, 0], sizes = [8, 32], strides = [1, 1]} : vector<8x128xf32> to vector<8x32xf32>
    %254 = vector.extract_strided_slice %252 {offsets = [0, 32], sizes = [8, 32], strides = [1, 1]} : vector<8x128xf32> to vector<8x32xf32>
    %255 = vector.extract_strided_slice %252 {offsets = [0, 64], sizes = [8, 32], strides = [1, 1]} : vector<8x128xf32> to vector<8x32xf32>
    %256 = vector.extract_strided_slice %252 {offsets = [0, 96], sizes = [8, 32], strides = [1, 1]} : vector<8x128xf32> to vector<8x32xf32>
    %257 = arith.index_cast %c5_i32 : i32 to index
    %c0_51 = arith.constant 0 : index
    %c0_52 = arith.constant 0 : index
    %258 = vector.load %arg12[%257, %c0_51, %c0_52] : memref<8x8x128xf32, #tpu.memory_space<vmem>>, vector<1x8x128xf32>
    %259 = vector.shape_cast %258 : vector<1x8x128xf32> to vector<8x128xf32>
    %260 = arith.truncf %253 : vector<8x32xf32> to vector<8x32xbf16>
    %cst_53 = arith.constant dense<0.000000e+00> : vector<8x128xf32>
    %261 = tpu.matmul %260, %19, %cst_53 {dimension_numbers = #tpu.dot_dimension_numbers<[1], [0], [0], [1], [0, 0, 1, 1], [], []>} : vector<8x32xbf16>, vector<32x128xbf16>, vector<8x128xf32> -> vector<8x128xf32>
    %262 = arith.addf %259, %261 : vector<8x128xf32>
    %263 = arith.negf %262 : vector<8x128xf32>
    %264 = math.exp %263 : vector<8x128xf32>
    %cst_54 = arith.constant 1.000000e+00 : f32
    %265 = vector.broadcast %cst_54 : f32 to vector<8x128xf32>
    %266 = arith.addf %265, %264 : vector<8x128xf32>
    %267 = arith.divf %265, %266 : vector<8x128xf32>
    %268 = math.tanh %262 : vector<8x128xf32>
    %269 = vector.extract_strided_slice %267 {offsets = [0, 0], sizes = [8, 32], strides = [1, 1]} : vector<8x128xf32> to vector<8x32xf32>
    %270 = vector.extract_strided_slice %267 {offsets = [0, 32], sizes = [8, 32], strides = [1, 1]} : vector<8x128xf32> to vector<8x32xf32>
    %271 = vector.extract_strided_slice %268 {offsets = [0, 64], sizes = [8, 32], strides = [1, 1]} : vector<8x128xf32> to vector<8x32xf32>
    %272 = vector.extract_strided_slice %267 {offsets = [0, 96], sizes = [8, 32], strides = [1, 1]} : vector<8x128xf32> to vector<8x32xf32>
    %273 = arith.mulf %270, %255 : vector<8x32xf32>
    %274 = arith.mulf %269, %271 : vector<8x32xf32>
    %275 = arith.addf %273, %274 : vector<8x32xf32>
    %276 = math.tanh %275 : vector<8x32xf32>
    %277 = arith.mulf %272, %276 : vector<8x32xf32>
    %278 = tpu.concatenate %277, %254 in 1 : vector<8x32xf32>, vector<8x32xf32> -> vector<8x64xf32>
    %279 = arith.truncf %278 : vector<8x64xf32> to vector<8x64xbf16>
    %cst_55 = arith.constant dense<0.000000e+00> : vector<8x128xf32>
    %280 = tpu.matmul %279, %20, %cst_55 {dimension_numbers = #tpu.dot_dimension_numbers<[1], [0], [0], [1], [0, 0, 1, 1], [], []>} : vector<8x64xbf16>, vector<64x128xbf16>, vector<8x128xf32> -> vector<8x128xf32>
    %281 = vector.broadcast %21 : vector<1x128xf32> to vector<8x128xf32>
    %282 = arith.addf %280, %281 : vector<8x128xf32>
    %283 = arith.negf %282 : vector<8x128xf32>
    %284 = math.exp %283 : vector<8x128xf32>
    %cst_56 = arith.constant 1.000000e+00 : f32
    %285 = vector.broadcast %cst_56 : f32 to vector<8x128xf32>
    %286 = arith.addf %285, %284 : vector<8x128xf32>
    %287 = arith.divf %285, %286 : vector<8x128xf32>
    %288 = math.tanh %282 : vector<8x128xf32>
    %289 = vector.extract_strided_slice %287 {offsets = [0, 0], sizes = [8, 32], strides = [1, 1]} : vector<8x128xf32> to vector<8x32xf32>
    %290 = vector.extract_strided_slice %287 {offsets = [0, 32], sizes = [8, 32], strides = [1, 1]} : vector<8x128xf32> to vector<8x32xf32>
    %291 = vector.extract_strided_slice %288 {offsets = [0, 64], sizes = [8, 32], strides = [1, 1]} : vector<8x128xf32> to vector<8x32xf32>
    %292 = vector.extract_strided_slice %287 {offsets = [0, 96], sizes = [8, 32], strides = [1, 1]} : vector<8x128xf32> to vector<8x32xf32>
    %293 = arith.mulf %290, %256 : vector<8x32xf32>
    %294 = arith.mulf %289, %291 : vector<8x32xf32>
    %295 = arith.addf %293, %294 : vector<8x32xf32>
    %296 = math.tanh %295 : vector<8x32xf32>
    %297 = arith.mulf %292, %296 : vector<8x32xf32>
    %298 = tpu.concatenate %277, %297, %275, %295 in 1 : vector<8x32xf32>, vector<8x32xf32>, vector<8x32xf32>, vector<8x32xf32> -> vector<8x128xf32>
    %c6_i32 = arith.constant 6 : i32
    %299 = vector.extract_strided_slice %298 {offsets = [0, 0], sizes = [8, 32], strides = [1, 1]} : vector<8x128xf32> to vector<8x32xf32>
    %300 = vector.extract_strided_slice %298 {offsets = [0, 32], sizes = [8, 32], strides = [1, 1]} : vector<8x128xf32> to vector<8x32xf32>
    %301 = vector.extract_strided_slice %298 {offsets = [0, 64], sizes = [8, 32], strides = [1, 1]} : vector<8x128xf32> to vector<8x32xf32>
    %302 = vector.extract_strided_slice %298 {offsets = [0, 96], sizes = [8, 32], strides = [1, 1]} : vector<8x128xf32> to vector<8x32xf32>
    %303 = arith.index_cast %c6_i32 : i32 to index
    %c0_57 = arith.constant 0 : index
    %c0_58 = arith.constant 0 : index
    %304 = vector.load %arg12[%303, %c0_57, %c0_58] : memref<8x8x128xf32, #tpu.memory_space<vmem>>, vector<1x8x128xf32>
    %305 = vector.shape_cast %304 : vector<1x8x128xf32> to vector<8x128xf32>
    %306 = arith.truncf %299 : vector<8x32xf32> to vector<8x32xbf16>
    %cst_59 = arith.constant dense<0.000000e+00> : vector<8x128xf32>
    %307 = tpu.matmul %306, %19, %cst_59 {dimension_numbers = #tpu.dot_dimension_numbers<[1], [0], [0], [1], [0, 0, 1, 1], [], []>} : vector<8x32xbf16>, vector<32x128xbf16>, vector<8x128xf32> -> vector<8x128xf32>
    %308 = arith.addf %305, %307 : vector<8x128xf32>
    %309 = arith.negf %308 : vector<8x128xf32>
    %310 = math.exp %309 : vector<8x128xf32>
    %cst_60 = arith.constant 1.000000e+00 : f32
    %311 = vector.broadcast %cst_60 : f32 to vector<8x128xf32>
    %312 = arith.addf %311, %310 : vector<8x128xf32>
    %313 = arith.divf %311, %312 : vector<8x128xf32>
    %314 = math.tanh %308 : vector<8x128xf32>
    %315 = vector.extract_strided_slice %313 {offsets = [0, 0], sizes = [8, 32], strides = [1, 1]} : vector<8x128xf32> to vector<8x32xf32>
    %316 = vector.extract_strided_slice %313 {offsets = [0, 32], sizes = [8, 32], strides = [1, 1]} : vector<8x128xf32> to vector<8x32xf32>
    %317 = vector.extract_strided_slice %314 {offsets = [0, 64], sizes = [8, 32], strides = [1, 1]} : vector<8x128xf32> to vector<8x32xf32>
    %318 = vector.extract_strided_slice %313 {offsets = [0, 96], sizes = [8, 32], strides = [1, 1]} : vector<8x128xf32> to vector<8x32xf32>
    %319 = arith.mulf %316, %301 : vector<8x32xf32>
    %320 = arith.mulf %315, %317 : vector<8x32xf32>
    %321 = arith.addf %319, %320 : vector<8x32xf32>
    %322 = math.tanh %321 : vector<8x32xf32>
    %323 = arith.mulf %318, %322 : vector<8x32xf32>
    %324 = tpu.concatenate %323, %300 in 1 : vector<8x32xf32>, vector<8x32xf32> -> vector<8x64xf32>
    %325 = arith.truncf %324 : vector<8x64xf32> to vector<8x64xbf16>
    %cst_61 = arith.constant dense<0.000000e+00> : vector<8x128xf32>
    %326 = tpu.matmul %325, %20, %cst_61 {dimension_numbers = #tpu.dot_dimension_numbers<[1], [0], [0], [1], [0, 0, 1, 1], [], []>} : vector<8x64xbf16>, vector<64x128xbf16>, vector<8x128xf32> -> vector<8x128xf32>
    %327 = vector.broadcast %21 : vector<1x128xf32> to vector<8x128xf32>
    %328 = arith.addf %326, %327 : vector<8x128xf32>
    %329 = arith.negf %328 : vector<8x128xf32>
    %330 = math.exp %329 : vector<8x128xf32>
    %cst_62 = arith.constant 1.000000e+00 : f32
    %331 = vector.broadcast %cst_62 : f32 to vector<8x128xf32>
    %332 = arith.addf %331, %330 : vector<8x128xf32>
    %333 = arith.divf %331, %332 : vector<8x128xf32>
    %334 = math.tanh %328 : vector<8x128xf32>
    %335 = vector.extract_strided_slice %333 {offsets = [0, 0], sizes = [8, 32], strides = [1, 1]} : vector<8x128xf32> to vector<8x32xf32>
    %336 = vector.extract_strided_slice %333 {offsets = [0, 32], sizes = [8, 32], strides = [1, 1]} : vector<8x128xf32> to vector<8x32xf32>
    %337 = vector.extract_strided_slice %334 {offsets = [0, 64], sizes = [8, 32], strides = [1, 1]} : vector<8x128xf32> to vector<8x32xf32>
    %338 = vector.extract_strided_slice %333 {offsets = [0, 96], sizes = [8, 32], strides = [1, 1]} : vector<8x128xf32> to vector<8x32xf32>
    %339 = arith.mulf %336, %302 : vector<8x32xf32>
    %340 = arith.mulf %335, %337 : vector<8x32xf32>
    %341 = arith.addf %339, %340 : vector<8x32xf32>
    %342 = math.tanh %341 : vector<8x32xf32>
    %343 = arith.mulf %338, %342 : vector<8x32xf32>
    %344 = tpu.concatenate %323, %343, %321, %341 in 1 : vector<8x32xf32>, vector<8x32xf32>, vector<8x32xf32>, vector<8x32xf32> -> vector<8x128xf32>
    %c7_i32 = arith.constant 7 : i32
    %345 = vector.extract_strided_slice %344 {offsets = [0, 0], sizes = [8, 32], strides = [1, 1]} : vector<8x128xf32> to vector<8x32xf32>
    %346 = vector.extract_strided_slice %344 {offsets = [0, 32], sizes = [8, 32], strides = [1, 1]} : vector<8x128xf32> to vector<8x32xf32>
    %347 = vector.extract_strided_slice %344 {offsets = [0, 64], sizes = [8, 32], strides = [1, 1]} : vector<8x128xf32> to vector<8x32xf32>
    %348 = vector.extract_strided_slice %344 {offsets = [0, 96], sizes = [8, 32], strides = [1, 1]} : vector<8x128xf32> to vector<8x32xf32>
    %349 = arith.index_cast %c7_i32 : i32 to index
    %c0_63 = arith.constant 0 : index
    %c0_64 = arith.constant 0 : index
    %350 = vector.load %arg12[%349, %c0_63, %c0_64] : memref<8x8x128xf32, #tpu.memory_space<vmem>>, vector<1x8x128xf32>
    %351 = vector.shape_cast %350 : vector<1x8x128xf32> to vector<8x128xf32>
    %352 = arith.truncf %345 : vector<8x32xf32> to vector<8x32xbf16>
    %cst_65 = arith.constant dense<0.000000e+00> : vector<8x128xf32>
    %353 = tpu.matmul %352, %19, %cst_65 {dimension_numbers = #tpu.dot_dimension_numbers<[1], [0], [0], [1], [0, 0, 1, 1], [], []>} : vector<8x32xbf16>, vector<32x128xbf16>, vector<8x128xf32> -> vector<8x128xf32>
    %354 = arith.addf %351, %353 : vector<8x128xf32>
    %355 = arith.negf %354 : vector<8x128xf32>
    %356 = math.exp %355 : vector<8x128xf32>
    %cst_66 = arith.constant 1.000000e+00 : f32
    %357 = vector.broadcast %cst_66 : f32 to vector<8x128xf32>
    %358 = arith.addf %357, %356 : vector<8x128xf32>
    %359 = arith.divf %357, %358 : vector<8x128xf32>
    %360 = math.tanh %354 : vector<8x128xf32>
    %361 = vector.extract_strided_slice %359 {offsets = [0, 0], sizes = [8, 32], strides = [1, 1]} : vector<8x128xf32> to vector<8x32xf32>
    %362 = vector.extract_strided_slice %359 {offsets = [0, 32], sizes = [8, 32], strides = [1, 1]} : vector<8x128xf32> to vector<8x32xf32>
    %363 = vector.extract_strided_slice %360 {offsets = [0, 64], sizes = [8, 32], strides = [1, 1]} : vector<8x128xf32> to vector<8x32xf32>
    %364 = vector.extract_strided_slice %359 {offsets = [0, 96], sizes = [8, 32], strides = [1, 1]} : vector<8x128xf32> to vector<8x32xf32>
    %365 = arith.mulf %362, %347 : vector<8x32xf32>
    %366 = arith.mulf %361, %363 : vector<8x32xf32>
    %367 = arith.addf %365, %366 : vector<8x32xf32>
    %368 = math.tanh %367 : vector<8x32xf32>
    %369 = arith.mulf %364, %368 : vector<8x32xf32>
    %370 = tpu.concatenate %369, %346 in 1 : vector<8x32xf32>, vector<8x32xf32> -> vector<8x64xf32>
    %371 = arith.truncf %370 : vector<8x64xf32> to vector<8x64xbf16>
    %cst_67 = arith.constant dense<0.000000e+00> : vector<8x128xf32>
    %372 = tpu.matmul %371, %20, %cst_67 {dimension_numbers = #tpu.dot_dimension_numbers<[1], [0], [0], [1], [0, 0, 1, 1], [], []>} : vector<8x64xbf16>, vector<64x128xbf16>, vector<8x128xf32> -> vector<8x128xf32>
    %373 = vector.broadcast %21 : vector<1x128xf32> to vector<8x128xf32>
    %374 = arith.addf %372, %373 : vector<8x128xf32>
    %375 = arith.negf %374 : vector<8x128xf32>
    %376 = math.exp %375 : vector<8x128xf32>
    %cst_68 = arith.constant 1.000000e+00 : f32
    %377 = vector.broadcast %cst_68 : f32 to vector<8x128xf32>
    %378 = arith.addf %377, %376 : vector<8x128xf32>
    %379 = arith.divf %377, %378 : vector<8x128xf32>
    %380 = math.tanh %374 : vector<8x128xf32>
    %381 = vector.extract_strided_slice %379 {offsets = [0, 0], sizes = [8, 32], strides = [1, 1]} : vector<8x128xf32> to vector<8x32xf32>
    %382 = vector.extract_strided_slice %379 {offsets = [0, 32], sizes = [8, 32], strides = [1, 1]} : vector<8x128xf32> to vector<8x32xf32>
    %383 = vector.extract_strided_slice %380 {offsets = [0, 64], sizes = [8, 32], strides = [1, 1]} : vector<8x128xf32> to vector<8x32xf32>
    %384 = vector.extract_strided_slice %379 {offsets = [0, 96], sizes = [8, 32], strides = [1, 1]} : vector<8x128xf32> to vector<8x32xf32>
    %385 = arith.mulf %382, %348 : vector<8x32xf32>
    %386 = arith.mulf %381, %383 : vector<8x32xf32>
    %387 = arith.addf %385, %386 : vector<8x32xf32>
    %388 = math.tanh %387 : vector<8x32xf32>
    %389 = arith.mulf %384, %388 : vector<8x32xf32>
    %390 = tpu.concatenate %369, %389, %367, %387 in 1 : vector<8x32xf32>, vector<8x32xf32>, vector<8x32xf32>, vector<8x32xf32> -> vector<8x128xf32>
    %c8_i32 = arith.constant 8 : i32
    %391 = vector.extract_strided_slice %390 {offsets = [0, 0], sizes = [8, 64], strides = [1, 1]} : vector<8x128xf32> to vector<8x64xf32>
    %c0_69 = arith.constant 0 : index
    %c0_70 = arith.constant 0 : index
    %392 = vector.load %arg9[%c0_69, %c0_70] : memref<1x64xf32, #tpu.memory_space<vmem>>, vector<1x64xf32>
    %393 = vector.broadcast %392 : vector<1x64xf32> to vector<8x64xf32>
    %394 = arith.mulf %391, %393 : vector<8x64xf32>
    %cst_71 = arith.constant dense<0.000000e+00> : vector<8xf32>
    %395 = vector.multi_reduction <add>, %394, %cst_71 [1] : vector<8x64xf32> to vector<8xf32>
    %396 = vector.shape_cast %395 : vector<8xf32> to vector<8x1xf32>
    %c0_72 = arith.constant 0 : index
    %c0_73 = arith.constant 0 : index
    %397 = vector.load %arg10[%c0_72, %c0_73] : memref<1x1xf32, #tpu.memory_space<vmem>>, vector<1x1xf32>
    %398 = vector.broadcast %397 : vector<1x1xf32> to vector<8x1xf32>
    %399 = arith.addf %396, %398 : vector<8x1xf32>
    %c0_74 = arith.constant 0 : index
    %c0_75 = arith.constant 0 : index
    %400 = vector.load %arg11[%c0_74, %c0_75] : memref<8x1xf32, #tpu.memory_space<vmem>>, vector<8x1xf32>
    tpu.vector_store %arg11[%c0_74, %c0_75], %399 {strides = array<i32>} : memref<8x1xf32, #tpu.memory_space<vmem>>, vector<8x1xf32>,
    return
  }
  func.func @transform_0(%arg0: i32) -> (i32, i32, i32) {
    %c0_i32 = arith.constant 0 : i32
    %c0_i32_0 = arith.constant 0 : i32
    %c0_i32_1 = arith.constant 0 : i32
    return %arg0, %c0_i32, %c0_i32_0 : i32, i32, i32
  }
  func.func @transform_1(%arg0: i32) -> (i32, i32) {
    %c0_i32 = arith.constant 0 : i32
    %c0_i32_0 = arith.constant 0 : i32
    %c0_i32_1 = arith.constant 0 : i32
    return %c0_i32, %c0_i32_0 : i32, i32
  }
  func.func @transform_2(%arg0: i32) -> (i32, i32) {
    %c0_i32 = arith.constant 0 : i32
    %c0_i32_0 = arith.constant 0 : i32
    %c0_i32_1 = arith.constant 0 : i32
    return %c0_i32, %c0_i32_0 : i32, i32
  }
  func.func @transform_3(%arg0: i32) -> (i32, i32) {
    %c0_i32 = arith.constant 0 : i32
    %c0_i32_0 = arith.constant 0 : i32
    %c0_i32_1 = arith.constant 0 : i32
    return %c0_i32, %c0_i32_0 : i32, i32
  }
  func.func @transform_4(%arg0: i32) -> (i32, i32) {
    %c0_i32 = arith.constant 0 : i32
    %c0_i32_0 = arith.constant 0 : i32
    %c0_i32_1 = arith.constant 0 : i32
    return %c0_i32, %c0_i32_0 : i32, i32
  }
  func.func @transform_5(%arg0: i32) -> (i32, i32) {
    %c0_i32 = arith.constant 0 : i32
    %c0_i32_0 = arith.constant 0 : i32
    %c0_i32_1 = arith.constant 0 : i32
    return %c0_i32, %c0_i32_0 : i32, i32
  }
  func.func @transform_6(%arg0: i32) -> (i32, i32) {
    %c0_i32 = arith.constant 0 : i32
    %c0_i32_0 = arith.constant 0 : i32
    %c0_i32_1 = arith.constant 0 : i32
    return %c0_i32, %c0_i32_0 : i32, i32
  }
  func.func @transform_7(%arg0: i32) -> (i32, i32) {
    %c0_i32 = arith.constant 0 : i32
    %c0_i32_0 = arith.constant 0 : i32
    %c0_i32_1 = arith.constant 0 : i32
    return %c0_i32, %c0_i32_0 : i32, i32
  }
  func.func @transform_8(%arg0: i32) -> (i32, i32) {
    %c0_i32 = arith.constant 0 : i32
    %c0_i32_0 = arith.constant 0 : i32
    %c0_i32_1 = arith.constant 0 : i32
    return %c0_i32, %c0_i32_0 : i32, i32
  }
  func.func @transform_9(%arg0: i32) -> (i32, i32) {
    %c0_i32 = arith.constant 0 : i32
    %c0_i32_0 = arith.constant 0 : i32
    %c0_i32_1 = arith.constant 0 : i32
    return %c0_i32, %c0_i32_0 : i32, i32
  }
  func.func @transform_10(%arg0: i32) -> (i32, i32) {
    %c0_i32 = arith.constant 0 : i32
    %c0_i32_0 = arith.constant 0 : i32
    return %arg0, %c0_i32 : i32, i32
  }
}

</mosaic_0001>

<bundles_post_ra>
// kernel: tpu_custom_call.1
= control target key start
LH: loop header
LB: loop body
LE: loop exit
PB: predicated region body
PF: predicated region fallthrough
CT: control target
= control target key end

     0   :  { %v2081_v0 = vmov 0   ;;  %v2082_v7 = vmov 0.0   ;;  %vm2083_vm0 = vmmov 0   ;;  %vm151_vm1 = vcmask 261120   ;;  %s2084_s12 = smov 64   ;;  %s2085_s13 = smov 32   ;;  %s2593_s0 = inlined_call_operand.vmem [shape: f32[1,64,1], index: 0, kind: input, shape index: {}]   ;;  %s2594_s3 = inlined_call_operand.vmem [shape: bf16[32,128], index: 3, kind: input, shape index: {}]   ;;  %s2595_s4 = inlined_call_operand.vmem [shape: bf16[32,128], index: 4, kind: input, shape index: {}]   ;;  %s2596_s1 = inlined_call_operand.vmem [shape: f32[1,32], index: 1, kind: input, shape index: {}]   ;;  %s2597_s2 = inlined_call_operand.vmem [shape: f32[1,32], index: 2, kind: input, shape index: {}]   ;;  %s2598_s5 = inlined_call_operand.vmem [shape: f32[1,128], index: 5, kind: input, shape index: {}]   ;;  %s2599_s6 = inlined_call_operand.vmem [shape: bf16[64,128], index: 6, kind: input, shape index: {}]   ;;  %s2600_s7 = inlined_call_operand.vmem [shape: f32[1,128], index: 7, kind: input, shape index: {}]   ;;  %s2601_s9 = inlined_call_operand.<no memory space> [shape: f32[1,1], index: 9, kind: input, shape index: {}]   ;;  %s2602_s8 = inlined_call_operand.vmem [shape: f32[1,64], index: 8, kind: input, shape index: {}]   ;;  %s2603_s10 = inlined_call_operand.vmem [shape: f32[8,1], index: 10, kind: output, shape index: {}]  }
   0x1   :  { %1936 = vset.pattern.permute.xlu1 %v2081_v0  ;;  %1935 = vset.pattern.permute.xlu0 %v2081_v0  ;;  %v40_v1 = vld [vmem:[%s2593_s0 + $0x10] sm:$0xff]  ;;  %v38_v2 = vld [vmem:[%s2593_s0] sm:$0xff]  ;;  %v41_v3 = vld [vmem:[%s2593_s0 + $0x18] sm:$0xff]  ;;  %vm367_vm2 = vcmask 523264   ;;  %vm449_vm3 = vcmask 785408   ;;  %s2086_s30 = smov 96  }
   0x2   :  { %59 = vperm.xlu1 %1936, %v40_v1   ;;  %49 = vperm.xlu0 %1935, %v38_v2   ;;  %v39_v4 = vld [vmem:[%s2593_s0 + $0x8] sm:$0xff]  ;;  %v1937_v5 = vld [vmem:[%s2594_s3] sm:$0xff]   ;;  %v44_v49 = vld [vmem:[%s2593_s0 + $0x30] sm:$0xff]  ;;  %vm1632_vm4 = vcmask 7168  }
   0x3   :  { %v2160_v6 = vld [vmem:[%s2595_s4] sm:$0xff]   ;;  %1757 = vmatprep.subr.bf16.mxu0 %v1937_v5  ;;  %1769 = vmatprep.subr.bf16.mxu1 %v2082_v7  ;;  %v1939_v8 = vld [vmem:[%s2594_s3 + $0x8] sm:$0xff]   ;;  %v45_v55 = vld [vmem:[%s2593_s0 + $0x38] sm:$0xff] }
   0x4   :  { %1758 = vmatpush3.bf16.msra.mxu0 %v1937_v5  ;;  %1770 = vmatpush3.bf16.msra.mxu1 %v2160_v6  ;;  %v2171_v9 = vld [vmem:[%s2595_s4 + $0x8] sm:$0xff]   ;;  %v2187_v10 = vld [vmem:[%s2596_s1] ss:$0 sm:$0xff]  ;;  %v2250_v58 = vld [vmem:[%s2599_s6 + $0x10] sm:$0xff]  }
   0x5   :  { %1771 = vmatprep.subr.bf16.mxu1 %v2082_v7  ;;  %1759 = vmatprep.subr.bf16.mxu0 %v1939_v8  ;;  %v2194_v15 = vld [vmem:[%s2597_s2] ss:$0 sm:$0xff]  ;;  %v43_v54 = vld [vmem:[%s2593_s0 + $0x28] sm:$0xff]  ;;  %v2257_v59 = vld [vmem:[%s2599_s6 + $0x18] sm:$0xff]  }
   0x6   :  { %64 = vperm.xlu1 %1936, %v41_v3   ;;  %54 = vperm.xlu0 %1935, %v39_v4   ;;  %v2207_v34 = vld [vmem:[%s2598_s5] ss:$0 sm:$0xff]  ;;  %v2243_v57 = vld [vmem:[%s2599_s6 + $0x8] sm:$0xff]  }
   0x7   :  { %1773 = vmatprep.mubr.msk.bf16.mxu1 %vm2083_vm0, %v2082_v7  ;;  %v42_v48 = vld [vmem:[%s2593_s0 + $0x20] sm:$0xff] }
   0x8   :  { %1760 = vmatpush3.bf16.msra.mxu0 %v1939_v8  ;;  %1772 = vmatpush3.bf16.msra.mxu1 %v2171_v9  ;;  %v2237_v56 = vld [vmem:[%s2599_s6] sm:$0xff]  }
   0x9   :  { %1777 = vmatprep.subr.bf16.mxu0 %v2082_v7  ;;  %1789 = vmatprep.subr.bf16.mxu1 %v2082_v7 }
   0xb   :  { %1774 = vmatmul.mubr.bf16.vlgmr.msra.gmra.mrb[0].mxu1 %v2081_v0 }
   0xc   :  { %1790 = vmatpush3.bf16.msra.mxu1 %v2160_v6  ;;  %1793 = vmatprep.mubr.msk.bf16.mxu1 %vm2083_vm0, %v2082_v7 }
   0xd   :  { %1791 = vmatprep.subr.bf16.mxu1 %v2082_v7 }
  0x10   :  { %1792 = vmatpush3.bf16.msra.mxu1 %v2171_v9 }
  0x11   :  { %1797 = vmatprep.subr.bf16.mxu1 %v2082_v7 }
  0x81   :  { %v60_v11 = vpop.permute.xlu1 %59  ;;  %v50_v12 = vpop.permute.xlu0 %49 }
  0x82   :  { %v95_v13 = vmul.f32 %v2187_v10, %v60_v11  ;;  %v93_v14 = vmul.f32 %v2187_v10, %v50_v12 }
  0x84   :  { %v110_v18 = vadd.f32 %v2194_v15, %v95_v13  ;;  %v108_v19 = vadd.f32 %v2194_v15, %v93_v14 }
  0x85   :  { %v65_v16 = vpop.permute.xlu1 %64  ;;  %v55_v17 = vpop.permute.xlu0 %54 }
  0x86   :  { %v96_v20 = vmul.f32 %v2187_v10, %v65_v16  ;;  %v94_v21 = vmul.f32 %v2187_v10, %v55_v17  ;;  %v118_v24 = vmax.f32 %v110_v18, 0.0  ;;  %v116_v26 = vmax.f32 %v108_v19, 0.0 }
  0x88   :  { %v111_v22 = vadd.f32 %v2194_v15, %v96_v20  ;;  %v109_v23 = vadd.f32 %v2194_v15, %v94_v21 }
  0x8a   :  { %v119_v25 = vmax.f32 %v111_v22, 0.0  ;;  %v117_v27 = vmax.f32 %v109_v23, 0.0 }
  0x8c   :  { %v125_v28 = vpack.c.bf16 %v119_v25, %v118_v24  ;;  %v124_v29 = vpack.c.bf16 %v117_v27, %v116_v26  ;;  %v2294_v26 = vld [vmem:[%s2600_s7] ss:$0 sm:$0xff] }
  0x8e   :  { %1761 = vmatprep.mubr.msk.bf16.mxu0 %vm151_vm1, %v124_v29 }
  0x8f   :  { %1762 = vmatmul.mubr.msk.bf16.vlgmr.msra.gmra.mrb[0].mxu0 %vm151_vm1, %v125_v28 }
  0x90   :  { %1778 = vmatpush3.bf16.msra.mxu0 %v2237_v56 }
  0x91   :  { %1779 = vmatprep.subr.bf16.mxu0 %v2082_v7 }
  0x94   :  { %1780 = vmatpush3.bf16.msra.mxu0 %v2243_v57 }
  0x95   :  { %1781 = vmatprep.subr.bf16.mxu0 %v2082_v7 }
  0x98   :  { %1782 = vmatpush3.bf16.msra.mxu0 %v2250_v58 }
  0x99   :  { %1783 = vmatprep.subr.bf16.mxu0 %v2082_v7 }
  0x9c   :  { %1784 = vmatpush3.bf16.msra.mxu0 %v2257_v59 }
  0x9d   :  { %1809 = vmatprep.subr.bf16.mxu0 %v2082_v7 }
  0xde   :  { %v300_v30 = vpop.f32.mrb[0].mxu1 }
  0xdf   :  { %v1775_v31 = vpop.f32.mrb[1].mxu1 }
  0xe0   :  { %v303_v32 = vpop.f32.mrb[2].mxu1 }
  0xe1   :  { %v1776_v33 = vpop.f32.mrb[3].mxu1 }
 0x162   :  { %v2209_v35 = vpop.f32.mrb[0].mxu0 }
 0x163   :  { %v198_v36 = vpop.f32.mrb[1].mxu0 }
 0x164   :  { %v199_v37 = vadd.f32 %v2207_v34, %v198_v36  ;;  %v2212_v38 = vpop.f32.mrb[2].mxu0 }
 0x165   :  { %v2214_v39 = vpop.f32.mrb[3].mxu0 }
 0x166   :  { %v306_v40 = vadd.f32 %v300_v30, %v199_v37 }
 0x168   :  { %1945 = vtanh.f32 %v306_v40  ;;  %v1649_v42 = vmul.f32 -1.442695, %v306_v40 }
 0x16a   :  { %1947 = vpow2.f32 %v1649_v42 }
 0x172   :  { %v1946_v41 = vpop.eup %1945 }
 0x173   :  { %316 = vrot.lane.b32.xlu0 %v1946_v41, %s2084_s12 }
 0x174   :  { %v1948_v43 = vpop.eup %1947 }
 0x175   :  { %v310_v44 = vadd.f32 1.0, %v1948_v43 }
 0x177   :  { %1949 = vrcp.f32 %v310_v44 }
 0x181   :  { %v1950_v45 = vpop.eup %1949 }
 0x182   :  { %v314_v50 = vmul.f32 0.0, %v1950_v45 }
 0x1e5   :  { %v317_v46 = vpop.permute.xlu0 %316 }
 0x1e6   :  { %v319_v47 = vmul.f32 %v1950_v45, %v317_v46 }
 0x1e8   :  { %321 = vrot.lane.b32.xlu1 %v319_v47, %s2085_s13 }
 0x1ec   :  { %69 = vperm.xlu1 %1936, %v42_v48  }
 0x1f0   :  { %79 = vperm.xlu1 %1936, %v44_v49  }
 0x25a   :  { %v322_v51 = vpop.permute.xlu1 %321 }
 0x25b   :  { %v2224_v52 = vadd.f32 %v322_v51, %v314_v50 }
 0x25d   :  { %1951 = vtanh.f32 %v2224_v52 }
 0x267   :  { %v1952_v53 = vpop.eup %1951 }
 0x268   :  { %327 = vrot.lane.b32.xlu0 %v1952_v53, %s2084_s12 }
 0x26b   :  { %v70_v62 = vpop.permute.xlu1 %69 }
 0x26c   :  { %74 = vperm.xlu0 %1935, %v43_v54   ;;  %v97_v63 = vmul.f32 %v2187_v10, %v70_v62 }
 0x26e   :  { %v112_v2 = vadd.f32 %v2194_v15, %v97_v63 }
 0x26f   :  { %v80_v0 = vpop.permute.xlu1 %79 }
 0x270   :  { %84 = vperm.xlu0 %1935, %v45_v55   ;;  %v99_v3 = vmul.f32 %v2187_v10, %v80_v0  ;;  %v120_v11 = vmax.f32 %v112_v2, 0.0 }
 0x272   :  { %v114_v12 = vadd.f32 %v2194_v15, %v99_v3 }
 0x274   :  { %v122_v18 = vmax.f32 %v114_v12, 0.0 }
 0x2da   :  { %v328_v60 = vpop.permute.xlu0 %327 }
 0x2db   :  { %v330_v61 = vmul.f32 %v1950_v45, %v328_v60 }
 0x2dd   :  { %332 = vrot.lane.b32.xlu1 %v330_v61, %s2085_s13 }
 0x2eb   :  { %v75_v1 = vpop.permute.xlu0 %74 }
 0x2ec   :  { %v98_v4 = vmul.f32 %v2187_v10, %v75_v1 }
 0x2ee   :  { %v113_v5 = vadd.f32 %v2194_v15, %v98_v4 }
 0x2ef   :  { %v85_v8 = vpop.permute.xlu0 %84 }
 0x2f0   :  { %v121_v13 = vmax.f32 %v113_v5, 0.0  ;;  %v100_v14 = vmul.f32 %v2187_v10, %v85_v8 }
 0x2f2   :  { %v126_v16 = vpack.c.bf16 %v121_v13, %v120_v11  ;;  %v115_v17 = vadd.f32 %v2194_v15, %v100_v14 }
 0x2f4   :  { %v123_v19 = vmax.f32 %v115_v17, 0.0  ;;  %1765 = vmatprep.mubr.msk.bf16.mxu0 %vm151_vm1, %v126_v16 }
 0x2f6   :  { %v127_v20 = vpack.c.bf16 %v123_v19, %v122_v18 }
 0x2f8   :  { %1766 = vmatmul.mubr.msk.bf16.gmra.mrb[4].mxu0 %vm151_vm1, %v127_v20 }
 0x2f9   :  { %1785 = vmatprep.mubr.msk.bf16.mxu0 %vm2083_vm0, %v2082_v7 }
 0x34f   :  { %v333_v21 = vpop.permute.xlu1 %332 }
 0x350   :  { %v335_v22 = vsel %vm151_vm1, %v333_v21, 0.0 }
 0x351   :  { %v336_v23 = vpack.c.bf16 %v335_v22, %v335_v22 }
 0x353   :  { %1786 = vmatmul.mubr.msk.bf16.vlgmr.msra.gmra.mrb[8].mxu0 %vm367_vm2, %v336_v23 }
 0x354   :  { %1810 = vmatpush3.bf16.msra.mxu0 %v2160_v6  ;;  %1813 = vmatprep.mubr.msk.bf16.mxu0 %vm2083_vm0, %v2082_v7 }
 0x355   :  { %1811 = vmatprep.subr.bf16.mxu0 %v2082_v7 }
 0x358   :  { %1812 = vmatpush3.bf16.msra.mxu0 %v2171_v9 }
 0x359   :  { %1817 = vmatprep.subr.bf16.mxu0 %v2082_v7 }
 0x3cb   :  { %v2283_v10 = vpop.f32.mrb[4].mxu0 }
 0x3cc   :  { %v2285_v15 = vpop.f32.mrb[5].mxu0 }
 0x3cd   :  { %v2287_v24 = vpop.f32.mrb[6].mxu0 }
 0x3ce   :  { %v2289_v25 = vpop.f32.mrb[7].mxu0 }
 0x426   :  { %v405_v27 = vpop.f32.mrb[8].mxu0 }
 0x427   :  { %v406_v28 = vadd.f32 %v2294_v26, %v405_v27  ;;  %v1787_v29 = vpop.f32.mrb[9].mxu0 }
 0x428   :  { %v408_v30 = vpop.f32.mrb[10].mxu0 }
 0x429   :  { %1953 = vtanh.f32 %v406_v28  ;;  %v1788_v31 = vpop.f32.mrb[11].mxu0  ;;  %v1656_v33 = vmul.f32 -1.442695, %v406_v28 }
 0x42b   :  { %1955 = vpow2.f32 %v1656_v33 }
 0x433   :  { %v1954_v32 = vpop.eup %1953 }
 0x434   :  { %420 = vrot.lane.b32.xlu0 %v1954_v32, %s2084_s12 }
 0x435   :  { %v1956_v36 = vpop.eup %1955 }
 0x436   :  { %v414_v37 = vadd.f32 1.0, %v1956_v36 }
 0x438   :  { %1957 = vrcp.f32 %v414_v37 }
 0x442   :  { %v1958_v40 = vpop.eup %1957 }
 0x443   :  { %v418_v43 = vmul.f32 0.0, %v1958_v40 }
 0x4a6   :  { %v421_v41 = vpop.permute.xlu0 %420 }
 0x4a7   :  { %v423_v42 = vmul.f32 %v1958_v40, %v421_v41 }
 0x4a9   :  { %425 = vrot.lane.b32.xlu1 %v423_v42, %s2085_s13 }
 0x51b   :  { %v426_v44 = vpop.permute.xlu1 %425 }
 0x51c   :  { %v428_v45 = vadd.f32 %v426_v44, %v418_v43 }
 0x51e   :  { %1959 = vtanh.f32 %v428_v45 }
 0x528   :  { %v1960_v46 = vpop.eup %1959 }
 0x529   :  { %431 = vrot.lane.b32.xlu0 %v1960_v46, %s2084_s12 }
 0x52d   :  { %440 = vrot.lane.b32.xlu0 %v2224_v52, %s2085_s13  ;;  %v202_v52 = vadd.f32 %v2207_v34, %v2214_v39 }
 0x59b   :  { %v432_v47 = vpop.permute.xlu0 %431 }
 0x59c   :  { %v434_v48 = vmul.f32 %v1958_v40, %v432_v47 }
 0x59e   :  { %436 = vrot.lane.b32.xlu1 %v434_v48, %s2084_s12 }
 0x59f   :  { %v441_v51 = vpop.permute.xlu0 %440 }
 0x5a2   :  { %444 = vrot.lane.b32.xlu1 %v428_v45, %s2084_s12 }
 0x610   :  { %v437_v49 = vpop.permute.xlu1 %436 }
 0x611   :  { %v447_v50 = vsel %vm151_vm1, %v333_v21, %v437_v49 }
 0x612   :  { %v448_v54 = vsel %vm367_vm2, %v447_v50, %v441_v51 }
 0x614   :  { %v445_v53 = vpop.permute.xlu1 %444 }
 0x615   :  { %v450_v55 = vsel %vm449_vm3, %v448_v54, %v445_v53 }
 0x616   :  { %v453_v60 = vpack.c.bf16 %v450_v55, %v450_v55  ;;  %506 = vrot.lane.b32.xlu1 %v450_v55, %s2086_s30 }
 0x618   :  { %1794 = vmatmul.mubr.msk.bf16.vlgmr.msra.gmra.mrb[4].mxu1 %vm151_vm1, %v453_v60 }
 0x619   :  { %1798 = vmatpush3.bf16.msra.mxu1 %v2237_v56  ;;  %1805 = vmatprep.mubr.msk.bf16.mxu1 %vm2083_vm0, %v2082_v7 }
 0x61a   :  { %1799 = vmatprep.subr.bf16.mxu1 %v2082_v7 }
 0x61d   :  { %1800 = vmatpush3.bf16.msra.mxu1 %v2243_v57 }
 0x61e   :  { %1801 = vmatprep.subr.bf16.mxu1 %v2082_v7 }
 0x621   :  { %1802 = vmatpush3.bf16.msra.mxu1 %v2250_v58 }
 0x622   :  { %1803 = vmatprep.subr.bf16.mxu1 %v2082_v7 }
 0x625   :  { %1804 = vmatpush3.bf16.msra.mxu1 %v2257_v59 }
 0x626   :  { %1829 = vmatprep.subr.bf16.mxu1 %v2082_v7 }
 0x688   :  { %v507_v39 = vpop.permute.xlu1 %506 }
 0x6eb   :  { %v491_v61 = vpop.f32.mrb[4].mxu1 }
 0x6ec   :  { %v497_v62 = vadd.f32 %v491_v61, %v202_v52  ;;  %v1795_v63 = vpop.f32.mrb[5].mxu1  ;;  %v207_v52 = vadd.f32 %v2209_v35, %v2207_v34 }
 0x6ed   :  { %v494_v0 = vpop.f32.mrb[6].mxu1 }
 0x6ee   :  { %1961 = vtanh.f32 %v497_v62  ;;  %v1796_v1 = vpop.f32.mrb[7].mxu1  ;;  %v1658_v3 = vmul.f32 -1.442695, %v497_v62 }
 0x6f0   :  { %1963 = vpow2.f32 %v1658_v3 }
 0x6f8   :  { %v1962_v2 = vpop.eup %1961 }
 0x6f9   :  { %511 = vrot.lane.b32.xlu0 %v1962_v2, %s2084_s12 }
 0x6fa   :  { %v1964_v4 = vpop.eup %1963 }
 0x6fb   :  { %v501_v5 = vadd.f32 1.0, %v1964_v4 }
 0x6fd   :  { %1965 = vrcp.f32 %v501_v5 }
 0x707   :  { %v1966_v8 = vpop.eup %1965 }
 0x708   :  { %v509_v13 = vmul.f32 %v1966_v8, %v507_v39 }
 0x76b   :  { %v512_v11 = vpop.permute.xlu0 %511 }
 0x76c   :  { %v514_v12 = vmul.f32 %v1966_v8, %v512_v11 }
 0x76e   :  { %516 = vrot.lane.b32.xlu0 %v514_v12, %s2085_s13 }
 0x7e0   :  { %v517_v14 = vpop.permute.xlu0 %516 }
 0x7e1   :  { %v519_v16 = vadd.f32 %v517_v14, %v509_v13 }
 0x7e3   :  { %1967 = vtanh.f32 %v519_v16 }
 0x7ed   :  { %v1968_v17 = vpop.eup %1967 }
 0x7ee   :  { %522 = vrot.lane.b32.xlu1 %v1968_v17, %s2084_s12 }
 0x860   :  { %v523_v18 = vpop.permute.xlu1 %522 }
 0x861   :  { %v525_v19 = vmul.f32 %v1966_v8, %v523_v18 }
 0x863   :  { %527 = vrot.lane.b32.xlu0 %v525_v19, %s2085_s13 }
 0x867   :  { %582 = vrot.lane.b32.xlu0 %v450_v55, %s2084_s12 }
 0x8d5   :  { %v528_v20 = vpop.permute.xlu0 %527 }
 0x8d6   :  { %v530_v21 = vsel %vm151_vm1, %v528_v20, %v450_v55 }
 0x8d7   :  { %v531_v22 = vpack.c.bf16 %v530_v21, %v530_v21 }
 0x8d9   :  { %1806 = vmatmul.mubr.msk.bf16.vlgmr.msra.gmra.mrb[8].mxu1 %vm367_vm2, %v531_v22  ;;  %v583_v42 = vpop.permute.xlu0 %582 }
 0x8da   :  { %1830 = vmatpush3.bf16.msra.mxu1 %v2160_v6  ;;  %1833 = vmatprep.mubr.msk.bf16.mxu1 %vm2083_vm0, %v2082_v7 }
 0x8db   :  { %1831 = vmatprep.subr.bf16.mxu1 %v2082_v7 }
 0x8de   :  { %1832 = vmatpush3.bf16.msra.mxu1 %v2171_v9 }
 0x8df   :  { %1837 = vmatprep.subr.bf16.mxu1 %v2082_v7 }
 0x9ac   :  { %v569_v23 = vpop.f32.mrb[8].mxu1 }
 0x9ad   :  { %v570_v27 = vadd.f32 %v2294_v26, %v569_v23  ;;  %v1807_v28 = vpop.f32.mrb[9].mxu1 }
 0x9ae   :  { %v572_v29 = vpop.f32.mrb[10].mxu1 }
 0x9af   :  { %1969 = vtanh.f32 %v570_v27  ;;  %v1808_v30 = vpop.f32.mrb[11].mxu1  ;;  %v1660_v32 = vmul.f32 -1.442695, %v570_v27 }
 0x9b1   :  { %1971 = vpow2.f32 %v1660_v32 }
 0x9b9   :  { %v1970_v31 = vpop.eup %1969 }
 0x9ba   :  { %587 = vrot.lane.b32.xlu1 %v1970_v31, %s2084_s12 }
 0x9bb   :  { %v1972_v33 = vpop.eup %1971 }
 0x9bc   :  { %v578_v36 = vadd.f32 1.0, %v1972_v33 }
 0x9be   :  { %1973 = vrcp.f32 %v578_v36 }
 0x9c8   :  { %v1974_v37 = vpop.eup %1973 }
 0x9c9   :  { %v585_v43 = vmul.f32 %v1974_v37, %v583_v42 }
 0xa2c   :  { %v588_v40 = vpop.permute.xlu1 %587 }
 0xa2d   :  { %v590_v41 = vmul.f32 %v1974_v37, %v588_v40 }
 0xa2f   :  { %592 = vrot.lane.b32.xlu1 %v590_v41, %s2085_s13 }
 0xaa1   :  { %v593_v44 = vpop.permute.xlu1 %592 }
 0xaa2   :  { %v595_v45 = vadd.f32 %v593_v44, %v585_v43 }
 0xaa4   :  { %1975 = vtanh.f32 %v595_v45 }
 0xaae   :  { %v1976_v46 = vpop.eup %1975 }
 0xaaf   :  { %598 = vrot.lane.b32.xlu0 %v1976_v46, %s2084_s12 }
 0xab3   :  { %607 = vrot.lane.b32.xlu0 %v519_v16, %s2085_s13 }
 0xb21   :  { %v599_v47 = vpop.permute.xlu0 %598 }
 0xb22   :  { %v601_v48 = vmul.f32 %v1974_v37, %v599_v47 }
 0xb24   :  { %603 = vrot.lane.b32.xlu1 %v601_v48, %s2084_s12 }
 0xb25   :  { %v608_v51 = vpop.permute.xlu0 %607 }
 0xb28   :  { %611 = vrot.lane.b32.xlu1 %v595_v45, %s2084_s12 }
 0xb96   :  { %v604_v49 = vpop.permute.xlu1 %603 }
 0xb97   :  { %v614_v50 = vsel %vm151_vm1, %v528_v20, %v604_v49 }
 0xb98   :  { %v615_v54 = vsel %vm367_vm2, %v614_v50, %v608_v51 }
 0xb9a   :  { %v612_v53 = vpop.permute.xlu1 %611 }
 0xb9b   :  { %v616_v55 = vsel %vm449_vm3, %v615_v54, %v612_v53 }
 0xb9c   :  { %v619_v60 = vpack.c.bf16 %v616_v55, %v616_v55  ;;  %672 = vrot.lane.b32.xlu1 %v616_v55, %s2086_s30 }
 0xb9e   :  { %1814 = vmatmul.mubr.msk.bf16.vlgmr.msra.gmra.mrb[12].mxu0 %vm151_vm1, %v619_v60  ;;  %v210_v60 = vadd.f32 %v2212_v38, %v2207_v34 }
 0xb9f   :  { %1818 = vmatpush3.bf16.msra.mxu0 %v2237_v56  ;;  %1825 = vmatprep.mubr.msk.bf16.mxu0 %vm2083_vm0, %v2082_v7 }
 0xba0   :  { %1819 = vmatprep.subr.bf16.mxu0 %v2082_v7 }
 0xba3   :  { %1820 = vmatpush3.bf16.msra.mxu0 %v2243_v57 }
 0xba4   :  { %1821 = vmatprep.subr.bf16.mxu0 %v2082_v7 }
 0xba7   :  { %1822 = vmatpush3.bf16.msra.mxu0 %v2250_v58 }
 0xba8   :  { %1823 = vmatprep.subr.bf16.mxu0 %v2082_v7 }
 0xbab   :  { %1824 = vmatpush3.bf16.msra.mxu0 %v2257_v59 }
 0xbac   :  { %1849 = vmatprep.subr.bf16.mxu0 %v2082_v7 }
 0xc0e   :  { %v673_v35 = vpop.permute.xlu1 %672 }
 0xc71   :  { %v657_v61 = vpop.f32.mrb[12].mxu0 }
 0xc72   :  { %v663_v62 = vadd.f32 %v657_v61, %v207_v52  ;;  %v1815_v63 = vpop.f32.mrb[13].mxu0 }
 0xc73   :  { %v660_v0 = vpop.f32.mrb[14].mxu0 }
 0xc74   :  { %1977 = vtanh.f32 %v663_v62  ;;  %v1816_v1 = vpop.f32.mrb[15].mxu0  ;;  %v1662_v3 = vmul.f32 -1.442695, %v663_v62 }
 0xc76   :  { %1979 = vpow2.f32 %v1662_v3 }
 0xc7e   :  { %v1978_v2 = vpop.eup %1977 }
 0xc7f   :  { %677 = vrot.lane.b32.xlu0 %v1978_v2, %s2084_s12 }
 0xc80   :  { %v1980_v4 = vpop.eup %1979 }
 0xc81   :  { %v667_v5 = vadd.f32 1.0, %v1980_v4 }
 0xc83   :  { %1981 = vrcp.f32 %v667_v5 }
 0xc8d   :  { %v1982_v8 = vpop.eup %1981 }
 0xc8e   :  { %v675_v39 = vmul.f32 %v1982_v8, %v673_v35 }
 0xcf1   :  { %v678_v11 = vpop.permute.xlu0 %677 }
 0xcf2   :  { %v680_v12 = vmul.f32 %v1982_v8, %v678_v11 }
 0xcf4   :  { %682 = vrot.lane.b32.xlu0 %v680_v12, %s2085_s13 }
 0xd66   :  { %v683_v13 = vpop.permute.xlu0 %682 }
 0xd67   :  { %v685_v14 = vadd.f32 %v683_v13, %v675_v39 }
 0xd69   :  { %1983 = vtanh.f32 %v685_v14 }
 0xd73   :  { %v1984_v16 = vpop.eup %1983 }
 0xd74   :  { %688 = vrot.lane.b32.xlu1 %v1984_v16, %s2084_s12 }
 0xde6   :  { %v689_v17 = vpop.permute.xlu1 %688 }
 0xde7   :  { %v691_v18 = vmul.f32 %v1982_v8, %v689_v17 }
 0xde9   :  { %693 = vrot.lane.b32.xlu0 %v691_v18, %s2085_s13 }
 0xded   :  { %748 = vrot.lane.b32.xlu0 %v616_v55, %s2084_s12 }
 0xe5b   :  { %v694_v19 = vpop.permute.xlu0 %693 }
 0xe5c   :  { %v696_v20 = vsel %vm151_vm1, %v694_v19, %v616_v55 }
 0xe5d   :  { %v697_v21 = vpack.c.bf16 %v696_v20, %v696_v20 }
 0xe5f   :  { %1826 = vmatmul.mubr.msk.bf16.vlgmr.msra.gmra.mrb[16].mxu0 %vm367_vm2, %v697_v21  ;;  %v749_v41 = vpop.permute.xlu0 %748 }
 0xe60   :  { %1850 = vmatpush3.bf16.msra.mxu0 %v2160_v6  ;;  %1853 = vmatprep.mubr.msk.bf16.mxu0 %vm2083_vm0, %v2082_v7 }
 0xe61   :  { %1851 = vmatprep.subr.bf16.mxu0 %v2082_v7 }
 0xe64   :  { %1852 = vmatpush3.bf16.msra.mxu0 %v2171_v9 }
 0xe65   :  { %1857 = vmatprep.subr.bf16.mxu0 %v2082_v7 }
 0xf32   :  { %v735_v22 = vpop.f32.mrb[16].mxu0 }
 0xf33   :  { %v736_v23 = vadd.f32 %v2294_v26, %v735_v22  ;;  %v1827_v27 = vpop.f32.mrb[17].mxu0 }
 0xf34   :  { %v738_v28 = vpop.f32.mrb[18].mxu0 }
 0xf35   :  { %1985 = vtanh.f32 %v736_v23  ;;  %v1828_v29 = vpop.f32.mrb[19].mxu0  ;;  %v1664_v31 = vmul.f32 -1.442695, %v736_v23 }
 0xf37   :  { %1987 = vpow2.f32 %v1664_v31 }
 0xf3f   :  { %v1986_v30 = vpop.eup %1985 }
 0xf40   :  { %753 = vrot.lane.b32.xlu1 %v1986_v30, %s2084_s12 }
 0xf41   :  { %v1988_v32 = vpop.eup %1987 }
 0xf42   :  { %v744_v33 = vadd.f32 1.0, %v1988_v32 }
 0xf44   :  { %1989 = vrcp.f32 %v744_v33 }
 0xf4e   :  { %v1990_v36 = vpop.eup %1989 }
 0xf4f   :  { %v751_v42 = vmul.f32 %v1990_v36, %v749_v41 }
 0xfb2   :  { %v754_v37 = vpop.permute.xlu1 %753 }
 0xfb3   :  { %v756_v40 = vmul.f32 %v1990_v36, %v754_v37 }
 0xfb5   :  { %758 = vrot.lane.b32.xlu1 %v756_v40, %s2085_s13 }
0x1027   :  { %v759_v43 = vpop.permute.xlu1 %758 }
0x1028   :  { %v761_v44 = vadd.f32 %v759_v43, %v751_v42 }
0x102a   :  { %1991 = vtanh.f32 %v761_v44 }
0x1034   :  { %v1992_v45 = vpop.eup %1991 }
0x1035   :  { %764 = vrot.lane.b32.xlu0 %v1992_v45, %s2084_s12 }
0x1039   :  { %773 = vrot.lane.b32.xlu0 %v685_v14, %s2085_s13 }
0x10a7   :  { %v765_v46 = vpop.permute.xlu0 %764 }
0x10a8   :  { %v767_v47 = vmul.f32 %v1990_v36, %v765_v46 }
0x10aa   :  { %769 = vrot.lane.b32.xlu1 %v767_v47, %s2084_s12 }
0x10ab   :  { %v774_v50 = vpop.permute.xlu0 %773 }
0x10ae   :  { %777 = vrot.lane.b32.xlu1 %v761_v44, %s2084_s12 }
0x111c   :  { %v770_v48 = vpop.permute.xlu1 %769 }
0x111d   :  { %v780_v49 = vsel %vm151_vm1, %v694_v19, %v770_v48 }
0x111e   :  { %v781_v53 = vsel %vm367_vm2, %v780_v49, %v774_v50 }
0x1120   :  { %v778_v51 = vpop.permute.xlu1 %777 }
0x1121   :  { %v782_v54 = vsel %vm449_vm3, %v781_v53, %v778_v51 }
0x1122   :  { %v785_v55 = vpack.c.bf16 %v782_v54, %v782_v54  ;;  %838 = vrot.lane.b32.xlu1 %v782_v54, %s2086_s30 }
0x1124   :  { %1834 = vmatmul.mubr.msk.bf16.vlgmr.msra.gmra.mrb[12].mxu1 %vm151_vm1, %v785_v55 }
0x1125   :  { %1838 = vmatpush3.bf16.msra.mxu1 %v2237_v56  ;;  %1845 = vmatprep.mubr.msk.bf16.mxu1 %vm2083_vm0, %v2082_v7 }
0x1126   :  { %1839 = vmatprep.subr.bf16.mxu1 %v2082_v7 }
0x1129   :  { %1840 = vmatpush3.bf16.msra.mxu1 %v2243_v57 }
0x112a   :  { %1841 = vmatprep.subr.bf16.mxu1 %v2082_v7 }
0x112d   :  { %1842 = vmatpush3.bf16.msra.mxu1 %v2250_v58 }
0x112e   :  { %1843 = vmatprep.subr.bf16.mxu1 %v2082_v7 }
0x1131   :  { %1844 = vmatpush3.bf16.msra.mxu1 %v2257_v59 }
0x1132   :  { %1869 = vmatprep.subr.bf16.mxu1 %v2082_v7 }
0x1194   :  { %v839_v38 = vpop.permute.xlu1 %838 }
0x11f7   :  { %v823_v52 = vpop.f32.mrb[12].mxu1 }
0x11f8   :  { %v829_v61 = vadd.f32 %v823_v52, %v210_v60  ;;  %v1835_v62 = vpop.f32.mrb[13].mxu1 }
0x11f9   :  { %v826_v63 = vpop.f32.mrb[14].mxu1 }
0x11fa   :  { %1993 = vtanh.f32 %v829_v61  ;;  %v1836_v0 = vpop.f32.mrb[15].mxu1  ;;  %v1666_v2 = vmul.f32 -1.442695, %v829_v61 }
0x11fc   :  { %1995 = vpow2.f32 %v1666_v2 }
0x1204   :  { %v1994_v1 = vpop.eup %1993 }
0x1205   :  { %843 = vrot.lane.b32.xlu0 %v1994_v1, %s2084_s12 }
0x1206   :  { %v1996_v3 = vpop.eup %1995 }
0x1207   :  { %v833_v4 = vadd.f32 1.0, %v1996_v3 }
0x1209   :  { %1997 = vrcp.f32 %v833_v4 }
0x1213   :  { %v1998_v5 = vpop.eup %1997 }
0x1214   :  { %v841_v12 = vmul.f32 %v1998_v5, %v839_v38 }
0x1277   :  { %v844_v8 = vpop.permute.xlu0 %843 }
0x1278   :  { %v846_v11 = vmul.f32 %v1998_v5, %v844_v8 }
0x127a   :  { %848 = vrot.lane.b32.xlu0 %v846_v11, %s2085_s13 }
0x12ec   :  { %v849_v35 = vpop.permute.xlu0 %848 }
0x12ed   :  { %v851_v39 = vadd.f32 %v849_v35, %v841_v12 }
0x12ef   :  { %1999 = vtanh.f32 %v851_v39 }
0x12f9   :  { %v2000_v13 = vpop.eup %1999 }
0x12fa   :  { %854 = vrot.lane.b32.xlu1 %v2000_v13, %s2084_s12 }
0x136c   :  { %v855_v14 = vpop.permute.xlu1 %854 }
0x136d   :  { %v857_v16 = vmul.f32 %v1998_v5, %v855_v14 }
0x136f   :  { %859 = vrot.lane.b32.xlu0 %v857_v16, %s2085_s13 }
0x1373   :  { %914 = vrot.lane.b32.xlu0 %v782_v54, %s2084_s12 }
0x13e1   :  { %v860_v17 = vpop.permute.xlu0 %859 }
0x13e2   :  { %v862_v18 = vsel %vm151_vm1, %v860_v17, %v782_v54  ;;  %v215_v54 = vadd.f32 %v2207_v34, %v2285_v15 }
0x13e3   :  { %v863_v19 = vpack.c.bf16 %v862_v18, %v862_v18 }
0x13e5   :  { %1846 = vmatmul.mubr.msk.bf16.vlgmr.msra.gmra.mrb[16].mxu1 %vm367_vm2, %v863_v19  ;;  %v915_v37 = vpop.permute.xlu0 %914 }
0x13e6   :  { %1870 = vmatpush3.bf16.msra.mxu1 %v2160_v6  ;;  %1873 = vmatprep.mubr.msk.bf16.mxu1 %vm2083_vm0, %v2082_v7 }
0x13e7   :  { %1871 = vmatprep.subr.bf16.mxu1 %v2082_v7 }
0x13ea   :  { %1872 = vmatpush3.bf16.msra.mxu1 %v2171_v9 }
0x13eb   :  { %1877 = vmatprep.subr.bf16.mxu1 %v2082_v7 }
0x14b8   :  { %v901_v20 = vpop.f32.mrb[16].mxu1 }
0x14b9   :  { %v902_v21 = vadd.f32 %v2294_v26, %v901_v20  ;;  %v1847_v22 = vpop.f32.mrb[17].mxu1 }
0x14ba   :  { %v904_v23 = vpop.f32.mrb[18].mxu1 }
0x14bb   :  { %2001 = vtanh.f32 %v902_v21  ;;  %v1848_v27 = vpop.f32.mrb[19].mxu1  ;;  %v1668_v29 = vmul.f32 -1.442695, %v902_v21 }
0x14bd   :  { %2003 = vpow2.f32 %v1668_v29 }
0x14c5   :  { %v2002_v28 = vpop.eup %2001 }
0x14c6   :  { %919 = vrot.lane.b32.xlu1 %v2002_v28, %s2084_s12 }
0x14c7   :  { %v2004_v30 = vpop.eup %2003 }
0x14c8   :  { %v910_v31 = vadd.f32 1.0, %v2004_v30 }
0x14ca   :  { %2005 = vrcp.f32 %v910_v31 }
0x14d4   :  { %v2006_v32 = vpop.eup %2005 }
0x14d5   :  { %v917_v40 = vmul.f32 %v2006_v32, %v915_v37 }
0x1538   :  { %v920_v33 = vpop.permute.xlu1 %919 }
0x1539   :  { %v922_v36 = vmul.f32 %v2006_v32, %v920_v33 }
0x153b   :  { %924 = vrot.lane.b32.xlu1 %v922_v36, %s2085_s13 }
0x15ad   :  { %v925_v41 = vpop.permute.xlu1 %924 }
0x15ae   :  { %v927_v42 = vadd.f32 %v925_v41, %v917_v40 }
0x15b0   :  { %2007 = vtanh.f32 %v927_v42 }
0x15ba   :  { %v2008_v43 = vpop.eup %2007 }
0x15bb   :  { %930 = vrot.lane.b32.xlu0 %v2008_v43, %s2084_s12 }
0x15bf   :  { %939 = vrot.lane.b32.xlu0 %v851_v39, %s2085_s13 }
0x162d   :  { %v931_v44 = vpop.permute.xlu0 %930 }
0x162e   :  { %v933_v45 = vmul.f32 %v2006_v32, %v931_v44 }
0x1630   :  { %935 = vrot.lane.b32.xlu1 %v933_v45, %s2084_s12 }
0x1631   :  { %v940_v48 = vpop.permute.xlu0 %939 }
0x1634   :  { %943 = vrot.lane.b32.xlu1 %v927_v42, %s2084_s12 }
0x16a2   :  { %v936_v46 = vpop.permute.xlu1 %935 }
0x16a3   :  { %v946_v47 = vsel %vm151_vm1, %v860_v17, %v936_v46 }
0x16a4   :  { %v947_v50 = vsel %vm367_vm2, %v946_v47, %v940_v48 }
0x16a6   :  { %v944_v49 = vpop.permute.xlu1 %943 }
0x16a7   :  { %v948_v51 = vsel %vm449_vm3, %v947_v50, %v944_v49 }
0x16a8   :  { %v951_v53 = vpack.c.bf16 %v948_v51, %v948_v51  ;;  %1004 = vrot.lane.b32.xlu1 %v948_v51, %s2086_s30 }
0x16aa   :  { %1854 = vmatmul.mubr.msk.bf16.vlgmr.msra.gmra.mrb[20].mxu0 %vm151_vm1, %v951_v53 }
0x16ab   :  { %1858 = vmatpush3.bf16.msra.mxu0 %v2237_v56  ;;  %1865 = vmatprep.mubr.msk.bf16.mxu0 %vm2083_vm0, %v2082_v7 }
0x16ac   :  { %1859 = vmatprep.subr.bf16.mxu0 %v2082_v7 }
0x16af   :  { %1860 = vmatpush3.bf16.msra.mxu0 %v2243_v57 }
0x16b0   :  { %1861 = vmatprep.subr.bf16.mxu0 %v2082_v7 }
0x16b3   :  { %1862 = vmatpush3.bf16.msra.mxu0 %v2250_v58 }
0x16b4   :  { %1863 = vmatprep.subr.bf16.mxu0 %v2082_v7 }
0x16b7   :  { %1864 = vmatpush3.bf16.msra.mxu0 %v2257_v59 }
0x16b8   :  { %1889 = vmatprep.subr.bf16.mxu0 %v2082_v7 }
0x171a   :  { %v1005_v15 = vpop.permute.xlu1 %1004 }
0x177d   :  { %v989_v55 = vpop.f32.mrb[20].mxu0 }
0x177e   :  { %v995_v60 = vadd.f32 %v989_v55, %v215_v54  ;;  %v1855_v52 = vpop.f32.mrb[21].mxu0 }
0x177f   :  { %v992_v61 = vpop.f32.mrb[22].mxu0 }
0x1780   :  { %2009 = vtanh.f32 %v995_v60  ;;  %v1856_v62 = vpop.f32.mrb[23].mxu0  ;;  %v1670_v0 = vmul.f32 -1.442695, %v995_v60 }
0x1782   :  { %2011 = vpow2.f32 %v1670_v0 }
0x178a   :  { %v2010_v63 = vpop.eup %2009 }
0x178b   :  { %1009 = vrot.lane.b32.xlu0 %v2010_v63, %s2084_s12 }
0x178c   :  { %v2012_v1 = vpop.eup %2011 }
0x178d   :  { %v999_v2 = vadd.f32 1.0, %v2012_v1 }
0x178f   :  { %2013 = vrcp.f32 %v999_v2 }
0x1799   :  { %v2014_v3 = vpop.eup %2013 }
0x179a   :  { %v1007_v8 = vmul.f32 %v2014_v3, %v1005_v15  ;;  %v2074_v15 = vld [vmem:[%s2595_s4 + $0x8] sm:$0xff]  }
0x17fd   :  { %v1010_v4 = vpop.permute.xlu0 %1009 }
0x17fe   :  { %v1012_v5 = vmul.f32 %v2014_v3, %v1010_v4 }
0x1800   :  { %1014 = vrot.lane.b32.xlu0 %v1012_v5, %s2085_s13  ;;  %v2073_v5 = vld [vmem:[%s2595_s4] sm:$0xff]  }
0x1872   :  { %v1015_v11 = vpop.permute.xlu0 %1014 }
0x1873   :  { %v1017_v38 = vadd.f32 %v1015_v11, %v1007_v8 }
0x1875   :  { %2015 = vtanh.f32 %v1017_v38 }
0x187f   :  { %v2016_v12 = vpop.eup %2015 }
0x1880   :  { %1020 = vrot.lane.b32.xlu1 %v2016_v12, %s2084_s12 }
0x18f2   :  { %v1021_v35 = vpop.permute.xlu1 %1020 }
0x18f3   :  { %v1023_v39 = vmul.f32 %v2014_v3, %v1021_v35 }
0x18f5   :  { %1025 = vrot.lane.b32.xlu0 %v1023_v39, %s2085_s13 }
0x18f9   :  { %1080 = vrot.lane.b32.xlu0 %v948_v51, %s2084_s12 }
0x1967   :  { %v1026_v13 = vpop.permute.xlu0 %1025 }
0x1968   :  { %v1028_v14 = vsel %vm151_vm1, %v1026_v13, %v948_v51 }
0x1969   :  { %v1029_v16 = vpack.c.bf16 %v1028_v14, %v1028_v14 }
0x196b   :  { %1866 = vmatmul.mubr.msk.bf16.vlgmr.msra.gmra.mrb[24].mxu0 %vm367_vm2, %v1029_v16  ;;  %v1081_v30 = vpop.permute.xlu0 %1080 }
0x196c   :  { %1890 = vmatpush3.bf16.msra.mxu0 %v2160_v6  ;;  %1893 = vmatprep.mubr.msk.bf16.mxu0 %vm2083_vm0, %v2082_v7 }
0x196d   :  { %1891 = vmatprep.subr.bf16.mxu0 %v2082_v7 }
0x1970   :  { %1892 = vmatpush3.bf16.msra.mxu0 %v2171_v9 }
0x1971   :  { %1897 = vmatprep.subr.bf16.mxu0 %v2082_v7 }
0x1a3e   :  { %v1067_v17 = vpop.f32.mrb[24].mxu0 }
0x1a3f   :  { %v1068_v18 = vadd.f32 %v2294_v26, %v1067_v17  ;;  %v1867_v19 = vpop.f32.mrb[25].mxu0 }
0x1a40   :  { %v1070_v20 = vpop.f32.mrb[26].mxu0 }
0x1a41   :  { %2017 = vtanh.f32 %v1068_v18  ;;  %v1868_v21 = vpop.f32.mrb[27].mxu0  ;;  %v1672_v6 = vmul.f32 -1.442695, %v1068_v18 }
0x1a43   :  { %2019 = vpow2.f32 %v1672_v6 }
0x1a4b   :  { %v2018_v22 = vpop.eup %2017 }
0x1a4c   :  { %1085 = vrot.lane.b32.xlu1 %v2018_v22, %s2084_s12 }
0x1a4d   :  { %v2020_v23 = vpop.eup %2019 }
0x1a4e   :  { %v1076_v27 = vadd.f32 1.0, %v2020_v23 }
0x1a50   :  { %2021 = vrcp.f32 %v1076_v27 }
0x1a5a   :  { %v2022_v28 = vpop.eup %2021 }
0x1a5b   :  { %v1083_v31 = vmul.f32 %v2022_v28, %v1081_v30 }
0x1abe   :  { %v1086_v29 = vpop.permute.xlu1 %1085 }
0x1abf   :  { %v1088_v9 = vmul.f32 %v2022_v28, %v1086_v29 }
0x1ac1   :  { %1090 = vrot.lane.b32.xlu1 %v1088_v9, %s2085_s13 }
0x1b33   :  { %v1091_v32 = vpop.permute.xlu1 %1090 }
0x1b34   :  { %v1093_v33 = vadd.f32 %v1091_v32, %v1083_v31 }
0x1b36   :  { %2023 = vtanh.f32 %v1093_v33 }
0x1b40   :  { %v2024_v36 = vpop.eup %2023 }
0x1b41   :  { %1096 = vrot.lane.b32.xlu0 %v2024_v36, %s2084_s12 }
0x1b45   :  { %1105 = vrot.lane.b32.xlu0 %v1017_v38, %s2085_s13 }
0x1bb3   :  { %v1097_v37 = vpop.permute.xlu0 %1096 }
0x1bb4   :  { %v1099_v40 = vmul.f32 %v2022_v28, %v1097_v37  ;;  %v2501_v37 = vld [vmem:[%s2599_s6] sm:$0xff]  }
0x1bb6   :  { %1101 = vrot.lane.b32.xlu1 %v1099_v40, %s2084_s12  ;;  %v2510_v40 = vld [vmem:[%s2599_s6 + $0x8] sm:$0xff]  }
0x1bb7   :  { %v1106_v43 = vpop.permute.xlu0 %1105 }
0x1bba   :  { %1109 = vrot.lane.b32.xlu1 %v1093_v33, %s2084_s12 }
0x1c28   :  { %v1102_v41 = vpop.permute.xlu1 %1101 }
0x1c29   :  { %v1112_v42 = vsel %vm151_vm1, %v1026_v13, %v1102_v41  ;;  %v2517_v41 = vld [vmem:[%s2599_s6 + $0x10] sm:$0xff]  }
0x1c2a   :  { %v1113_v45 = vsel %vm367_vm2, %v1112_v42, %v1106_v43  ;;  %v2524_v42 = vld [vmem:[%s2599_s6 + $0x18] sm:$0xff]   ;;  %v2530_v43 = vld [vmem:[%s2598_s5] ss:$0 sm:$0xff] }
0x1c2c   :  { %v1110_v44 = vpop.permute.xlu1 %1109 }
0x1c2d   :  { %v1114_v46 = vsel %vm449_vm3, %v1113_v45, %v1110_v44  ;;  %v223_v44 = vadd.f32 %v2530_v43, %v2283_v10 }
0x1c2e   :  { %v1117_v47 = vpack.c.bf16 %v1114_v46, %v1114_v46  ;;  %1170 = vrot.lane.b32.xlu1 %v1114_v46, %s2086_s30 }
0x1c30   :  { %1874 = vmatmul.mubr.msk.bf16.vlgmr.msra.gmra.mrb[20].mxu1 %vm151_vm1, %v1117_v47 }
0x1c31   :  { %1878 = vmatpush3.bf16.msra.mxu1 %v2237_v56  ;;  %1885 = vmatprep.mubr.msk.bf16.mxu1 %vm2083_vm0, %v2082_v7  ;;  %v218_v56 = vadd.f32 %v2207_v34, %v2289_v25 }
0x1c32   :  { %1879 = vmatprep.subr.bf16.mxu1 %v2082_v7 }
0x1c35   :  { %1880 = vmatpush3.bf16.msra.mxu1 %v2243_v57 }
0x1c36   :  { %1881 = vmatprep.subr.bf16.mxu1 %v2082_v7 }
0x1c39   :  { %1882 = vmatpush3.bf16.msra.mxu1 %v2250_v58 }
0x1c3a   :  { %1883 = vmatprep.subr.bf16.mxu1 %v2082_v7 }
0x1c3d   :  { %1884 = vmatpush3.bf16.msra.mxu1 %v2257_v59 }
0x1c3e   :  { %1909 = vmatprep.subr.bf16.mxu1 %v2082_v7 }
0x1ca0   :  { %v1171_v34 = vpop.permute.xlu1 %1170 }
0x1d03   :  { %v1155_v48 = vpop.f32.mrb[20].mxu1 }
0x1d04   :  { %v1161_v49 = vadd.f32 %v1155_v48, %v218_v56  ;;  %v1875_v50 = vpop.f32.mrb[21].mxu1 }
0x1d05   :  { %v1158_v51 = vpop.f32.mrb[22].mxu1 }
0x1d06   :  { %2025 = vtanh.f32 %v1161_v49  ;;  %v1876_v53 = vpop.f32.mrb[23].mxu1  ;;  %v1674_v54 = vmul.f32 -1.442695, %v1161_v49 }
0x1d08   :  { %2027 = vpow2.f32 %v1674_v54 }
0x1d10   :  { %v2026_v57 = vpop.eup %2025 }
0x1d11   :  { %1175 = vrot.lane.b32.xlu0 %v2026_v57, %s2084_s12 }
0x1d12   :  { %v2028_v58 = vpop.eup %2027 }
0x1d13   :  { %v1165_v55 = vadd.f32 1.0, %v2028_v58 }
0x1d15   :  { %2029 = vrcp.f32 %v1165_v55 }
0x1d1f   :  { %v2030_v59 = vpop.eup %2029 }
0x1d20   :  { %v1173_v25 = vmul.f32 %v2030_v59, %v1171_v34 }
0x1d83   :  { %v1176_v60 = vpop.permute.xlu0 %1175 }
0x1d84   :  { %v1178_v52 = vmul.f32 %v2030_v59, %v1176_v60 }
0x1d86   :  { %1180 = vrot.lane.b32.xlu0 %v1178_v52, %s2085_s13 }
0x1df8   :  { %v1181_v61 = vpop.permute.xlu0 %1180 }
0x1df9   :  { %v1183_v62 = vadd.f32 %v1181_v61, %v1173_v25 }
0x1dfb   :  { %2031 = vtanh.f32 %v1183_v62 }
0x1e05   :  { %v2032_v63 = vpop.eup %2031 }
0x1e06   :  { %1186 = vrot.lane.b32.xlu1 %v2032_v63, %s2084_s12 }
0x1e78   :  { %v1187_v0 = vpop.permute.xlu1 %1186 }
0x1e79   :  { %v1189_v1 = vmul.f32 %v2030_v59, %v1187_v0 }
0x1e7b   :  { %1191 = vrot.lane.b32.xlu0 %v1189_v1, %s2085_s13 }
0x1e7f   :  { %1246 = vrot.lane.b32.xlu0 %v1114_v46, %s2084_s12 }
0x1eed   :  { %v1192_v2 = vpop.permute.xlu0 %1191 }
0x1eee   :  { %v1194_v3 = vsel %vm151_vm1, %v1192_v2, %v1114_v46 }
0x1eef   :  { %v1195_v4 = vpack.c.bf16 %v1194_v3, %v1194_v3 }
0x1ef1   :  { %1886 = vmatmul.mubr.msk.bf16.vlgmr.msra.gmra.mrb[24].mxu1 %vm367_vm2, %v1195_v4  ;;  %v1247_v20 = vpop.permute.xlu0 %1246 }
0x1ef2   :  { %1910 = vmatpush3.bf16.msra.mxu1 %v2073_v5  ;;  %1913 = vmatprep.mubr.msk.bf16.mxu1 %vm2083_vm0, %v2082_v7 }
0x1ef3   :  { %1911 = vmatprep.subr.bf16.mxu1 %v2082_v7 }
0x1ef6   :  { %1912 = vmatpush3.bf16.msra.mxu1 %v2074_v15 }
0x1ef7   :  { %1917 = vmatprep.subr.bf16.mxu1 %v2082_v7 }
0x1fc4   :  { %v1233_v8 = vpop.f32.mrb[24].mxu1 }
0x1fc5   :  { %v1234_v11 = vadd.f32 %v2294_v26, %v1233_v8  ;;  %v1887_v38 = vpop.f32.mrb[25].mxu1 }
0x1fc6   :  { %v1236_v12 = vpop.f32.mrb[26].mxu1 }
0x1fc7   :  { %2033 = vtanh.f32 %v1234_v11  ;;  %v1888_v35 = vpop.f32.mrb[27].mxu1  ;;  %v1676_v13 = vmul.f32 -1.442695, %v1234_v11 }
0x1fc9   :  { %2035 = vpow2.f32 %v1676_v13 }
0x1fd1   :  { %v2034_v39 = vpop.eup %2033 }
0x1fd2   :  { %1251 = vrot.lane.b32.xlu1 %v2034_v39, %s2084_s12 }
0x1fd3   :  { %v2036_v14 = vpop.eup %2035 }
0x1fd4   :  { %v1242_v16 = vadd.f32 1.0, %v2036_v14 }
0x1fd6   :  { %2037 = vrcp.f32 %v1242_v16 }
0x1fe0   :  { %v2038_v17 = vpop.eup %2037 }
0x1fe1   :  { %v1249_v21 = vmul.f32 %v2038_v17, %v1247_v20 }
0x2044   :  { %v1252_v18 = vpop.permute.xlu1 %1251 }
0x2045   :  { %v1254_v19 = vmul.f32 %v2038_v17, %v1252_v18 }
0x2047   :  { %1256 = vrot.lane.b32.xlu1 %v1254_v19, %s2085_s13 }
0x20b9   :  { %v1257_v22 = vpop.permute.xlu1 %1256 }
0x20ba   :  { %v1259_v6 = vadd.f32 %v1257_v22, %v1249_v21 }
0x20bc   :  { %2039 = vtanh.f32 %v1259_v6 }
0x20c6   :  { %v2040_v23 = vpop.eup %2039 }
0x20c7   :  { %1262 = vrot.lane.b32.xlu0 %v2040_v23, %s2084_s12 }
0x20cb   :  { %1271 = vrot.lane.b32.xlu0 %v1183_v62, %s2085_s13 }
0x2139   :  { %v1263_v27 = vpop.permute.xlu0 %1262 }
0x213a   :  { %v1265_v28 = vmul.f32 %v2038_v17, %v1263_v27 }
0x213c   :  { %1267 = vrot.lane.b32.xlu1 %v1265_v28, %s2084_s12  ;;  %v226_v28 = vadd.f32 %v2530_v43, %v2287_v24 }
0x213d   :  { %v1272_v30 = vpop.permute.xlu0 %1271 }
0x2140   :  { %1275 = vrot.lane.b32.xlu1 %v1259_v6, %s2084_s12 }
0x21ae   :  { %v1268_v29 = vpop.permute.xlu1 %1267 }
0x21af   :  { %v1278_v9 = vsel %vm151_vm1, %v1192_v2, %v1268_v29 }
0x21b0   :  { %v1279_v32 = vsel %vm367_vm2, %v1278_v9, %v1272_v30 }
0x21b2   :  { %v1276_v31 = vpop.permute.xlu1 %1275 }
0x21b3   :  { %v1280_v33 = vsel %vm449_vm3, %v1279_v32, %v1276_v31 }
0x21b4   :  { %v1283_v36 = vpack.c.bf16 %v1280_v33, %v1280_v33  ;;  %1336 = vrot.lane.b32.xlu1 %v1280_v33, %s2086_s30 }
0x21b6   :  { %1894 = vmatmul.mubr.msk.bf16.vlgmr.msra.gmra.mrb[28].mxu0 %vm151_vm1, %v1283_v36 }
0x21b7   :  { %1898 = vmatpush3.bf16.msra.mxu0 %v2501_v37  ;;  %1905 = vmatprep.mubr.msk.bf16.mxu0 %vm2083_vm0, %v2082_v7 }
0x21b8   :  { %1899 = vmatprep.subr.bf16.mxu0 %v2082_v7 }
0x21bb   :  { %1900 = vmatpush3.bf16.msra.mxu0 %v2510_v40 }
0x21bc   :  { %1901 = vmatprep.subr.bf16.mxu0 %v2082_v7 }
0x21bf   :  { %1902 = vmatpush3.bf16.msra.mxu0 %v2517_v41 }
0x21c0   :  { %1903 = vmatprep.subr.bf16.mxu0 %v2082_v7 }
0x21c3   :  { %1904 = vmatpush3.bf16.msra.mxu0 %v2524_v42 }
0x2226   :  { %v1337_v10 = vpop.permute.xlu1 %1336 }
0x2289   :  { %v1321_v45 = vpop.f32.mrb[28].mxu0 }
0x228a   :  { %v1327_v46 = vadd.f32 %v1321_v45, %v223_v44  ;;  %v1895_v47 = vpop.f32.mrb[29].mxu0 }
0x228b   :  { %v1324_v56 = vpop.f32.mrb[30].mxu0 }
0x228c   :  { %2041 = vtanh.f32 %v1327_v46  ;;  %v1896_v48 = vpop.f32.mrb[31].mxu0  ;;  %v1678_v50 = vmul.f32 -1.442695, %v1327_v46 }
0x228e   :  { %2043 = vpow2.f32 %v1678_v50 }
0x2296   :  { %v2042_v49 = vpop.eup %2041 }
0x2297   :  { %1341 = vrot.lane.b32.xlu0 %v2042_v49, %s2084_s12 }
0x2298   :  { %v2044_v51 = vpop.eup %2043 }
0x2299   :  { %v1331_v53 = vadd.f32 1.0, %v2044_v51 }
0x229b   :  { %2045 = vrcp.f32 %v1331_v53  ;;  %v2080_v53 = vld [vmem:[%s2600_s7] ss:$0 sm:$0xff] }
0x22a5   :  { %v2046_v57 = vpop.eup %2045 }
0x22a6   :  { %v1339_v55 = vmul.f32 %v2046_v57, %v1337_v10 }
0x2309   :  { %v1342_v54 = vpop.permute.xlu0 %1341 }
0x230a   :  { %v1344_v58 = vmul.f32 %v2046_v57, %v1342_v54 }
0x230c   :  { %1346 = vrot.lane.b32.xlu0 %v1344_v58, %s2085_s13 }
0x237e   :  { %v1347_v59 = vpop.permute.xlu0 %1346 }
0x237f   :  { %v1349_v60 = vadd.f32 %v1347_v59, %v1339_v55 }
0x2381   :  { %2047 = vtanh.f32 %v1349_v60 }
0x238b   :  { %v2048_v52 = vpop.eup %2047 }
0x238c   :  { %1352 = vrot.lane.b32.xlu1 %v2048_v52, %s2084_s12 }
0x23fe   :  { %v1353_v34 = vpop.permute.xlu1 %1352 }
0x23ff   :  { %v1355_v25 = vmul.f32 %v2046_v57, %v1353_v34 }
0x2401   :  { %1357 = vrot.lane.b32.xlu0 %v1355_v25, %s2085_s13 }
0x2405   :  { %1412 = vrot.lane.b32.xlu0 %v1280_v33, %s2084_s12 }
0x2473   :  { %v1358_v61 = vpop.permute.xlu0 %1357 }
0x2474   :  { %v1360_v62 = vsel %vm151_vm1, %v1358_v61, %v1280_v33 }
0x2475   :  { %v1361_v63 = vpack.c.bf16 %v1360_v62, %v1360_v62 }
0x2477   :  { %1906 = vmatmul.mubr.msk.bf16.vlgmr.msra.gmra.mrb[32].mxu0 %vm367_vm2, %v1361_v63  ;;  %v1413_v39 = vpop.permute.xlu0 %1412 }
0x254a   :  { %v1399_v0 = vpop.f32.mrb[32].mxu0 }
0x254b   :  { %v1400_v1 = vadd.f32 %v2294_v26, %v1399_v0  ;;  %v1907_v2 = vpop.f32.mrb[33].mxu0 }
0x254c   :  { %v1402_v3 = vpop.f32.mrb[34].mxu0 }
0x254d   :  { %2049 = vtanh.f32 %v1400_v1  ;;  %v1908_v4 = vpop.f32.mrb[35].mxu0  ;;  %v1680_v15 = vmul.f32 -1.442695, %v1400_v1  ;;  %v15_v3 = vstv %s2601_s9 }
0x254e   :  { %16 = vst [vmem:[#allocation3] sm:$0x1] %v15_v3 }
0x254f   :  { %2051 = vpow2.f32 %v1680_v15 }
0x2557   :  { %v2050_v5 = vpop.eup %2049 }
0x2558   :  { %1417 = vrot.lane.b32.xlu1 %v2050_v5, %s2084_s12 }
0x2559   :  { %v2052_v8 = vpop.eup %2051 }
0x255a   :  { %v1408_v11 = vadd.f32 1.0, %v2052_v8 }
0x255c   :  { %2053 = vrcp.f32 %v1408_v11 }
0x2566   :  { %v2054_v38 = vpop.eup %2053 }
0x2567   :  { %v1415_v13 = vmul.f32 %v2054_v38, %v1413_v39 }
0x25ca   :  { %v1418_v12 = vpop.permute.xlu1 %1417 }
0x25cb   :  { %v1420_v35 = vmul.f32 %v2054_v38, %v1418_v12 }
0x25cd   :  { %1422 = vrot.lane.b32.xlu1 %v1420_v35, %s2085_s13 }
0x263f   :  { %v1423_v26 = vpop.permute.xlu1 %1422 }
0x2640   :  { %v1425_v14 = vadd.f32 %v1423_v26, %v1415_v13 }
0x2642   :  { %2055 = vtanh.f32 %v1425_v14 }
0x264c   :  { %v2056_v16 = vpop.eup %2055 }
0x264d   :  { %1428 = vrot.lane.b32.xlu0 %v2056_v16, %s2084_s12 }
0x2651   :  { %1437 = vrot.lane.b32.xlu0 %v1349_v60, %s2085_s13 }
0x26bf   :  { %v1429_v17 = vpop.permute.xlu0 %1428 }
0x26c0   :  { %v1431_v18 = vmul.f32 %v2054_v38, %v1429_v17  ;;  %v1685_v38 = vld [vmem:[%s2602_s8] ss:$0 sm:$0xff] }
0x26c2   :  { %1433 = vrot.lane.b32.xlu1 %v1431_v18, %s2084_s12 }
0x26c3   :  { %v1438_v21 = vpop.permute.xlu0 %1437 }
0x26c6   :  { %1441 = vrot.lane.b32.xlu1 %v1425_v14, %s2084_s12  ;;  %v1686_v14 = vld [vmem:[#allocation3] ss:$0 sm:$0xff] }
0x2734   :  { %v1434_v19 = vpop.permute.xlu1 %1433 }
0x2735   :  { %v1444_v20 = vsel %vm151_vm1, %v1358_v61, %v1434_v19 }
0x2736   :  { %v1445_v6 = vsel %vm367_vm2, %v1444_v20, %v1438_v21 }
0x2738   :  { %v1442_v22 = vpop.permute.xlu1 %1441 }
0x2739   :  { %v1446_v23 = vsel %vm449_vm3, %v1445_v6, %v1442_v22 }
0x273a   :  { %v1449_v27 = vpack.c.bf16 %v1446_v23, %v1446_v23  ;;  %1502 = vrot.lane.b32.xlu1 %v1446_v23, %s2086_s30 }
0x273c   :  { %1914 = vmatmul.mubr.msk.bf16.vlgmr.msra.gmra.mrb[28].mxu1 %vm151_vm1, %v1449_v27 }
0x273d   :  { %1918 = vmatpush3.bf16.msra.mxu1 %v2501_v37  ;;  %1925 = vmatprep.mubr.msk.bf16.mxu1 %vm2083_vm0, %v2082_v7 }
0x273e   :  { %1919 = vmatprep.subr.bf16.mxu1 %v2082_v7 }
0x2741   :  { %1920 = vmatpush3.bf16.msra.mxu1 %v2510_v40 }
0x2742   :  { %1921 = vmatprep.subr.bf16.mxu1 %v2082_v7 }
0x2745   :  { %1922 = vmatpush3.bf16.msra.mxu1 %v2517_v41 }
0x2746   :  { %1923 = vmatprep.subr.bf16.mxu1 %v2082_v7 }
0x2749   :  { %1924 = vmatpush3.bf16.msra.mxu1 %v2524_v42 }
0x27ac   :  { %v1503_v24 = vpop.permute.xlu1 %1502 }
0x280f   :  { %v1487_v29 = vpop.f32.mrb[28].mxu1 }
0x2810   :  { %v1493_v9 = vadd.f32 %v1487_v29, %v226_v28  ;;  %v1915_v30 = vpop.f32.mrb[29].mxu1 }
0x2811   :  { %v1490_v31 = vpop.f32.mrb[30].mxu1 }
0x2812   :  { %2057 = vtanh.f32 %v1493_v9  ;;  %v1916_v32 = vpop.f32.mrb[31].mxu1  ;;  %v1682_v36 = vmul.f32 -1.442695, %v1493_v9 }
0x2814   :  { %2059 = vpow2.f32 %v1682_v36 }
0x281c   :  { %v2058_v33 = vpop.eup %2057 }
0x281d   :  { %1507 = vrot.lane.b32.xlu0 %v2058_v33, %s2084_s12 }
0x281e   :  { %v2060_v37 = vpop.eup %2059 }
0x281f   :  { %v1497_v40 = vadd.f32 1.0, %v2060_v37 }
0x2821   :  { %2061 = vrcp.f32 %v1497_v40 }
0x282b   :  { %v2062_v7 = vpop.eup %2061 }
0x282c   :  { %v1505_v43 = vmul.f32 %v2062_v7, %v1503_v24 }
0x288f   :  { %v1508_v41 = vpop.permute.xlu0 %1507 }
0x2890   :  { %v1510_v42 = vmul.f32 %v2062_v7, %v1508_v41 }
0x2892   :  { %1512 = vrot.lane.b32.xlu0 %v1510_v42, %s2085_s13 }
0x2904   :  { %v1513_v44 = vpop.permute.xlu0 %1512 }
0x2905   :  { %v1515_v45 = vadd.f32 %v1513_v44, %v1505_v43 }
0x2907   :  { %2063 = vtanh.f32 %v1515_v45 }
0x2911   :  { %v2064_v46 = vpop.eup %2063 }
0x2912   :  { %1518 = vrot.lane.b32.xlu1 %v2064_v46, %s2084_s12 }
0x2984   :  { %v1519_v47 = vpop.permute.xlu1 %1518 }
0x2985   :  { %v1521_v56 = vmul.f32 %v2062_v7, %v1519_v47 }
0x2987   :  { %1523 = vrot.lane.b32.xlu0 %v1521_v56, %s2085_s13 }
0x298b   :  { %1578 = vrot.lane.b32.xlu0 %v1446_v23, %s2084_s12 }
0x29f9   :  { %v1524_v48 = vpop.permute.xlu0 %1523 }
0x29fa   :  { %v1526_v49 = vsel %vm151_vm1, %v1524_v48, %v1446_v23 }
0x29fb   :  { %v1527_v50 = vpack.c.bf16 %v1526_v49, %v1526_v49 }
0x29fd   :  { %1926 = vmatmul.mubr.msk.bf16.vlgmr.msra.gmra.mrb[32].mxu1 %vm367_vm2, %v1527_v50  ;;  %v1579_v62 = vpop.permute.xlu0 %1578 }
0x2ad0   :  { %v1565_v51 = vpop.f32.mrb[32].mxu1 }
0x2ad1   :  { %v1566_v57 = vadd.f32 %v2080_v53, %v1565_v51  ;;  %v1927_v54 = vpop.f32.mrb[33].mxu1 }
0x2ad2   :  { %v1568_v58 = vpop.f32.mrb[34].mxu1 }
0x2ad3   :  { %2065 = vtanh.f32 %v1566_v57  ;;  %v1928_v10 = vpop.f32.mrb[35].mxu1  ;;  %v1684_v59 = vmul.f32 -1.442695, %v1566_v57 }
0x2ad5   :  { %2067 = vpow2.f32 %v1684_v59 }
0x2add   :  { %v2066_v55 = vpop.eup %2065 }
0x2ade   :  { %1583 = vrot.lane.b32.xlu1 %v2066_v55, %s2084_s12 }
0x2adf   :  { %v2068_v60 = vpop.eup %2067 }
0x2ae0   :  { %v1574_v52 = vadd.f32 1.0, %v2068_v60 }
0x2ae2   :  { %2069 = vrcp.f32 %v1574_v52 }
0x2aec   :  { %v2070_v34 = vpop.eup %2069 }
0x2aed   :  { %v1581_v63 = vmul.f32 %v2070_v34, %v1579_v62 }
0x2b50   :  { %v1584_v25 = vpop.permute.xlu1 %1583 }
0x2b51   :  { %v1586_v61 = vmul.f32 %v2070_v34, %v1584_v25 }
0x2b53   :  { %1588 = vrot.lane.b32.xlu1 %v1586_v61, %s2085_s13 }
0x2bc5   :  { %v1589_v0 = vpop.permute.xlu1 %1588 }
0x2bc6   :  { %v1591_v1 = vadd.f32 %v1589_v0, %v1581_v63 }
0x2bc8   :  { %2071 = vtanh.f32 %v1591_v1 }
0x2bd2   :  { %v2072_v2 = vpop.eup %2071 }
0x2bd3   :  { %1594 = vrot.lane.b32.xlu0 %v2072_v2, %s2084_s12 }
0x2bd7   :  { %1603 = vrot.lane.b32.xlu0 %v1515_v45, %s2085_s13 }
0x2c45   :  { %v1595_v4 = vpop.permute.xlu0 %1594 }
0x2c46   :  { %v1597_v5 = vmul.f32 %v2070_v34, %v1595_v4 }
0x2c48   :  { %1599 = vrot.lane.b32.xlu1 %v1597_v5, %s2084_s12 }
0x2c49   :  { %v1604_v11 = vpop.permute.xlu0 %1603 }
0x2c4c   :  { %1607 = vrot.lane.b32.xlu1 %v1591_v1, %s2084_s12 }
0x2cba   :  { %v1600_v15 = vpop.permute.xlu1 %1599 }
0x2cbb   :  { %v1610_v8 = vsel %vm151_vm1, %v1524_v48, %v1600_v15 }
0x2cbc   :  { %v1611_v35 = vsel %vm367_vm2, %v1610_v8, %v1604_v11 }
0x2cbe   :  { %v1608_v12 = vpop.permute.xlu1 %1607 }
0x2cbf   :  { %v1612_v39 = vsel %vm449_vm3, %v1611_v35, %v1608_v12 }
0x2cc0   :  { %v1620_v13 = vmul.f32 %v1685_v38, %v1612_v39 }
0x2cc2   :  { %v1621_v26 = vsel %vm367_vm2, %v1620_v13, 0.0 }
0x2cc3   :  { %1622 = vadd.xlane.f32.xlu0 %v1621_v26 }
0x2d50   :  { %v1623_v16 = vpop.xlane.xlu0 %1622 }
0x2d51   :  { %v1631_v17 = vadd.f32 %v1686_v14, %v1623_v16 }
0x2d53   :  { %1633 = vst.msk [vmem:[%s2603_s10] sm:$0xff] %vm1632_vm4, %v1631_v17 }

</bundles_post_ra>
